<compile_context>
chip_gen: v6e
topology: v6e:2x2x1
jax: 0.10.0
libtpu: 0.0.40
codegen_flags: <defaults>
</compile_context>

<pallas_src>
import functools

import jax
import jax.numpy as jnp
from jax.experimental import pallas as pl
from jax.experimental.pallas import tpu as pltpu


# ------------------------------ tiling helpers -------------------------------

def _pick_tile(n, target, align):
    """Largest tile t <= target with n % t == 0 and t % align == 0, else n."""
    t = min(n, target)
    if t == n:
        return n
    t = (t // align) * align
    while t >= align:
        if n % t == 0:
            return t
        t -= align
    return n


def _pick_tile_2way(n, target, align):
    """Like _pick_tile but prefers >=2 grid steps (v7x megacore sharding)."""
    t = _pick_tile(n, target, align)
    if n // t < 2:
        half = max(align, (n // 2) // align * align)
        t2 = _pick_tile(n, half, align)
        if t2 < n and n // t2 >= 2:
            t = t2
    return t


# --------------------------- GroupNorm statistics ----------------------------

def _gn_stats_kernel(x_ref, mask_ref, maskt_ref, stats_ref, s1_ref, s2_ref, *,
                     eps, inv_n):
    t = pl.program_id(1)

    @pl.when(t == 0)
    def _():
        s1_ref[...] = jnp.zeros_like(s1_ref)
        s2_ref[...] = jnp.zeros_like(s2_ref)

    x = x_ref[0]                                            # (thw, C) f32
    s1_ref[...] += jnp.sum(x, axis=0, keepdims=True)        # (1, C)
    s2_ref[...] += jnp.sum(x * x, axis=0, keepdims=True)    # (1, C)

    @pl.when(t == pl.num_programs(1) - 1)
    def _():
        mask = mask_ref[...]                                # (C, G)
        maskt = maskt_ref[...]                              # (G, C)
        g1 = jnp.dot(s1_ref[...], mask, preferred_element_type=jnp.float32)
        g2 = jnp.dot(s2_ref[...], mask, preferred_element_type=jnp.float32)
        mean_g = g1 * inv_n
        var_g = g2 * inv_n - mean_g * mean_g                # biased (PyTorch)
        inv_g = jax.lax.rsqrt(var_g + eps)
        mean_c = jnp.dot(mean_g, maskt, preferred_element_type=jnp.float32)
        inv_c = jnp.dot(inv_g, maskt, preferred_element_type=jnp.float32)
        stats_ref[0] = jnp.concatenate([mean_c, inv_c], axis=0)   # (2, C)


def pallas_group_norm_stats(x3, *, num_groups=32, eps=1e-6, thw_target=2048):
    """x3: (B, HW, C) f32 -> stats (B, 2, C) f32 = [mean_c; inv_std_c]."""
    B, hw, C = x3.shape
    cg = C // num_groups
    mask = (jnp.arange(C)[:, None] // cg ==
            jnp.arange(num_groups)[None, :]).astype(jnp.float32)   # (C, G)
    maskt = mask.T                                                 # (G, C)

    thw = _pick_tile(hw, thw_target, 8)
    n_t = hw // thw
    inv_n = 1.0 / float(hw * cg)

    return pl.pallas_call(
        functools.partial(_gn_stats_kernel, eps=eps, inv_n=inv_n),
        out_shape=jax.ShapeDtypeStruct((B, 2, C), jnp.float32),
        grid_spec=pltpu.PrefetchScalarGridSpec(
            num_scalar_prefetch=0,
            grid=(B, n_t),
            in_specs=[pl.BlockSpec((1, thw, C), lambda b, t: (b, t, 0)),
                      pl.BlockSpec((C, num_groups), lambda b, t: (0, 0)),
                      pl.BlockSpec((num_groups, C), lambda b, t: (0, 0))],
            out_specs=pl.BlockSpec((1, 2, C), lambda b, t: (b, 0, 0)),
            scratch_shapes=[pltpu.VMEM((1, C), jnp.float32),
                            pltpu.VMEM((1, C), jnp.float32)]),
        compiler_params=pltpu.CompilerParams(
            dimension_semantics=("parallel", "arbitrary")),
    )(x3, mask, maskt)


# ------------------- fused GroupNorm-apply + QKV projection ------------------

def _gn_qkv_kernel(x_ref, stats_ref, g_ref, b_ref, w_ref, bias_ref,
                   q_ref, k_ref, v_ref, *, C):
    x = x_ref[0]                                            # (tm, C) f32
    st = stats_ref[0]                                       # (2, C)  f32
    hnorm = (x - st[0:1, :]) * st[1:2, :] * g_ref[...] + b_ref[...]
    # fused 1x1-conv q|k|v matmul; softmax scale already folded into W_q/b_q.
    y = jnp.dot(hnorm.astype(jnp.bfloat16), w_ref[...],
                preferred_element_type=jnp.float32)         # (tm, 3C) f32
    y = y + bias_ref[...]
    q_ref[0] = y[:, :C].astype(q_ref.dtype)
    k_ref[0] = y[:, C:2 * C].astype(k_ref.dtype)
    v_ref[0] = y[:, 2 * C:].astype(v_ref.dtype)


def pallas_gn_qkv(x3, stats, gamma, beta, w_qkv, b_qkv, *, tm_target=512):
    """Normalize x and project to q, k, v in one pass.

    x3: (B, HW, C) f32; stats: (B, 2, C) f32; gamma/beta: (1, C) f32;
    w_qkv: (C, 3C) bf16 (q columns pre-scaled); b_qkv: (1, 3C) f32.
    Returns q, k, v each (B, HW, C) bf16.
    """
    B, hw, C = x3.shape
    tm = _pick_tile(hw, tm_target, 8)
    n_m = hw // tm

    out_sd = jax.ShapeDtypeStruct((B, hw, C), jnp.bfloat16)
    q, k, v = pl.pallas_call(
        functools.partial(_gn_qkv_kernel, C=C),
        out_shape=(out_sd, out_sd, out_sd),
        grid_spec=pltpu.PrefetchScalarGridSpec(
            num_scalar_prefetch=0,
            grid=(B, n_m),
            in_specs=[pl.BlockSpec((1, tm, C), lambda b, m: (b, m, 0)),
                      pl.BlockSpec((1, 2, C), lambda b, m: (b, 0, 0)),
                      pl.BlockSpec((1, C), lambda b, m: (0, 0)),
                      pl.BlockSpec((1, C), lambda b, m: (0, 0)),
                      pl.BlockSpec((C, 3 * C), lambda b, m: (0, 0)),
                      pl.BlockSpec((1, 3 * C), lambda b, m: (0, 0))],
            out_specs=[pl.BlockSpec((1, tm, C), lambda b, m: (b, m, 0)),
                       pl.BlockSpec((1, tm, C), lambda b, m: (b, m, 0)),
                       pl.BlockSpec((1, tm, C), lambda b, m: (b, m, 0))]),
        compiler_params=pltpu.CompilerParams(
            dimension_semantics=("parallel", "parallel")),
    )(x3, stats, gamma, beta, w_qkv, b_qkv)
    return q, k, v


# ------------------------ flash attention (online softmax) -------------------

def _flash_attn_kernel(q_ref, k_ref, v_ref, o_ref, m_ref, l_ref, acc_ref):
    ki = pl.program_id(2)

    @pl.when(ki == 0)
    def _():
        m_ref[...] = jnp.full_like(m_ref, -jnp.inf)
        l_ref[...] = jnp.zeros_like(l_ref)
        acc_ref[...] = jnp.zeros_like(acc_ref)

    q = q_ref[0]                      # (tq, C) bf16 (scale folded into W_q)
    k = k_ref[0]                      # (tk, C) bf16 (untransposed in HBM)
    v = v_ref[0]                      # (tk, C) bf16

    # In-kernel K transpose: lands on the XLU slot, which has slack vs MXU here.
    s = jnp.dot(q, k.T, preferred_element_type=jnp.float32)       # (tq, tk) f32
    m_prev = m_ref[...]
    m_new = jnp.maximum(m_prev, jnp.max(s, axis=-1, keepdims=True))
    alpha = jnp.exp(m_prev - m_new)
    p = jnp.exp(s - m_new)
    l_ref[...] = alpha * l_ref[...] + jnp.sum(p, axis=-1, keepdims=True)
    acc_ref[...] = alpha * acc_ref[...] + jnp.dot(
        p.astype(v.dtype), v, preferred_element_type=jnp.float32)
    m_ref[...] = m_new

    @pl.when(ki == pl.num_programs(2) - 1)
    def _():
        o_ref[0] = (acc_ref[...] *
                    pl.reciprocal(l_ref[...], approx=True)).astype(o_ref.dtype)


def pallas_flash_attention(q, k, v, *, tq_target=512, tk_target=512):
    """q, k, v: (B, HW, C) bf16 (scale pre-folded into q).  Returns (B, HW, C) bf16."""
    B, HW, C = q.shape
    tq = _pick_tile(HW, tq_target, 8)
    tk = _pick_tile(HW, tk_target, 128)

    return pl.pallas_call(
        _flash_attn_kernel,
        out_shape=jax.ShapeDtypeStruct((B, HW, C), jnp.bfloat16),
        grid_spec=pltpu.PrefetchScalarGridSpec(
            num_scalar_prefetch=0,
            grid=(B, HW // tq, HW // tk),
            in_specs=[pl.BlockSpec((1, tq, C), lambda b, qi, ki: (b, qi, 0)),
                      pl.BlockSpec((1, tk, C), lambda b, qi, ki: (b, ki, 0)),
                      pl.BlockSpec((1, tk, C), lambda b, qi, ki: (b, ki, 0))],
            out_specs=pl.BlockSpec((1, tq, C), lambda b, qi, ki: (b, qi, 0)),
            scratch_shapes=[pltpu.VMEM((tq, 1), jnp.float32),
                            pltpu.VMEM((tq, 1), jnp.float32),
                            pltpu.VMEM((tq, C), jnp.float32)]),
        compiler_params=pltpu.CompilerParams(
            dimension_semantics=("parallel", "parallel", "arbitrary")),
    )(q, k, v)


# ----------------------- fused proj_out + residual add -----------------------

def _proj_residual_kernel(o_ref, w_ref, bias_ref, x_ref, out_ref):
    y = jnp.dot(o_ref[...], w_ref[...], preferred_element_type=jnp.float32)
    out_ref[...] = y + bias_ref[...] + x_ref[...]


def pallas_proj_residual(o3, x3, w_proj, b_proj, *, tm_target=512):
    """out = o3 @ W_proj + b_proj + x3.  o3 bf16, x3 f32, returns (B, HW, C) f32."""
    B, hw, C = o3.shape
    M = B * hw
    o2 = o3.reshape(M, C)
    x2 = x3.reshape(M, C)
    tm = _pick_tile_2way(M, tm_target, 8)

    out = pl.pallas_call(
        _proj_residual_kernel,
        out_shape=jax.ShapeDtypeStruct((M, C), jnp.float32),
        grid_spec=pltpu.PrefetchScalarGridSpec(
            num_scalar_prefetch=0,
            grid=(M // tm,),
            in_specs=[pl.BlockSpec((tm, C), lambda i: (i, 0)),
                      pl.BlockSpec((C, C), lambda i: (0, 0)),
                      pl.BlockSpec((1, C), lambda i: (0, 0)),
                      pl.BlockSpec((tm, C), lambda i: (i, 0))],
            out_specs=pl.BlockSpec((tm, C), lambda i: (i, 0))),
        compiler_params=pltpu.CompilerParams(
            dimension_semantics=("parallel",)),
    )(o2, w_proj, b_proj, x2)
    return out.reshape(B, hw, C)


# ------------------------------- AttnBlock -----------------------------------

def conv1x1_params(key, cin, cout):
    k1, k2 = jax.random.split(key)
    w = jax.random.normal(k1, (cin, cout), jnp.float32) * 0.05
    b = jax.random.normal(k2, (1, cout), jnp.float32) * 0.05
    return {'w': w, 'b': b}


def attn_block_params(key, ch):
    kq, kk, kv, kp = jax.random.split(key, 4)
    return {
        'norm_g': jnp.ones((1, ch), jnp.float32),
        'norm_b': jnp.zeros((1, ch), jnp.float32),
        'q': conv1x1_params(kq, ch, ch),
        'k': conv1x1_params(kk, ch, ch),
        'v': conv1x1_params(kv, ch, ch),
        'proj': conv1x1_params(kp, ch, ch),
    }


def attn_block_forward(x_nchw, p):
    """Matches AttnBlock.forward: x + proj_out(attn(norm(x)))."""
    x = jnp.transpose(x_nchw, (0, 2, 3, 1))          # NCHW -> NHWC
    B, H, W, C = x.shape
    hw = H * W
    x3 = x.reshape(B, hw, C)

    # Fused QKV weight [W_q*scale | W_k | W_v]; softmax scale folded into W_q/b_q
    # (scaling the (C, C) weight on the host is free vs. a per-call HBM pass).
    scale = float(C) ** (-0.5)
    w_qkv = jnp.concatenate(
        [p['q']['w'] * scale, p['k']['w'], p['v']['w']],
        axis=1).astype(jnp.bfloat16)                  # (C, 3C) bf16
    b_qkv = jnp.concatenate(
        [p['q']['b'] * scale, p['k']['b'], p['v']['b']], axis=1)   # (1, 3C) f32
    w_proj = p['proj']['w'].astype(jnp.bfloat16)
    b_proj = p['proj']['b']

    stats = pallas_group_norm_stats(x3, num_groups=32, eps=1e-6)
    q, k, v = pallas_gn_qkv(x3, stats, p['norm_g'], p['norm_b'], w_qkv, b_qkv)
    o = pallas_flash_attention(q, k, v)
    out = pallas_proj_residual(o, x3, w_proj, b_proj)

    return jnp.transpose(out.reshape(B, H, W, C), (0, 3, 1, 2))   # NHWC -> NCHW


# ----------------------------------- main ------------------------------------

if __name__ == "__main__":
    key = jax.random.PRNGKey(0)
    kparam, kx = jax.random.split(key)

    # ch must be a multiple of 32 (GroupNorm num_groups=32).
    B, C, H, W = 2, 64, 8, 8
    params = attn_block_params(kparam, C)
    x = jax.random.normal(kx, (B, C, H, W), jnp.float32)   # NCHW, as PyTorch

    fwd = jax.jit(lambda xx: attn_block_forward(xx, params))
    out = fwd(x)
    jax.block_until_ready(out)
    assert out.shape == (B, C, H, W), out.shape
    assert bool(jnp.all(jnp.isfinite(out)))
    print("KERNEL_OK")
</pallas_src>

<mosaic_0001>
module attributes {stable_mosaic.version = 11 : i64} {
  func.func @_gn_stats_kernel(%arg0: i32, %arg1: i32, %arg2: memref<1x64x64xf32, #tpu.memory_space<vmem>>, %arg3: memref<64x32xf32, #tpu.memory_space<vmem>>, %arg4: memref<32x64xf32, #tpu.memory_space<vmem>>, %arg5: memref<1x2x64xf32, #tpu.memory_space<vmem>>, %arg6: memref<1x64xf32, #tpu.memory_space<vmem>>, %arg7: memref<1x64xf32, #tpu.memory_space<vmem>>) attributes {dimension_semantics = [#tpu.dimension_semantics<parallel>, #tpu.dimension_semantics<arbitrary>], iteration_bounds = array<i64: 2, 1>, scalar_prefetch = 0 : i64, scratch_operands = 2 : i64, tpu.core_type = #tpu.core_type<tc>, window_params = [{transform_indices = @transform_0, window_bounds = array<i64: 1, 64, 64>}, {pipeline_mode = #tpu.pipeline_mode<synchronous>, transform_indices = @transform_1, window_bounds = array<i64: 64, 32>}, {pipeline_mode = #tpu.pipeline_mode<synchronous>, transform_indices = @transform_2, window_bounds = array<i64: 32, 64>}, {transform_indices = @transform_3, window_bounds = array<i64: 1, 2, 64>}]} {
    %c0_i32 = arith.constant 0 : i32
    %0 = arith.cmpi eq, %arg1, %c0_i32 : i32
    %1 = arith.extui %0 : i1 to i32
    %c0_i32_0 = arith.constant 0 : i32
    %2 = arith.cmpi ne, %1, %c0_i32_0 : i32
    scf.if %2 {
      %cst_14 = arith.constant 0.000000e+00 : f32
      %19 = vector.broadcast %cst_14 : f32 to vector<1x64xf32>
      %c0_15 = arith.constant 0 : index
      %c0_16 = arith.constant 0 : index
      %20 = vector.load %arg6[%c0_15, %c0_16] : memref<1x64xf32, #tpu.memory_space<vmem>>, vector<1x64xf32>
      tpu.vector_store %arg6[%c0_15, %c0_16], %19 {strides = array<i32>} : memref<1x64xf32, #tpu.memory_space<vmem>>, vector<1x64xf32>,
      %cst_17 = arith.constant 0.000000e+00 : f32
      %21 = vector.broadcast %cst_17 : f32 to vector<1x64xf32>
      %c0_18 = arith.constant 0 : index
      %c0_19 = arith.constant 0 : index
      %22 = vector.load %arg7[%c0_18, %c0_19] : memref<1x64xf32, #tpu.memory_space<vmem>>, vector<1x64xf32>
      tpu.vector_store %arg7[%c0_18, %c0_19], %21 {strides = array<i32>} : memref<1x64xf32, #tpu.memory_space<vmem>>, vector<1x64xf32>,
    } else {
    }
    %c0 = arith.constant 0 : index
    %c0_1 = arith.constant 0 : index
    %c0_2 = arith.constant 0 : index
    %3 = vector.load %arg2[%c0, %c0_1, %c0_2] : memref<1x64x64xf32, #tpu.memory_space<vmem>>, vector<1x64x64xf32>
    %4 = vector.shape_cast %3 : vector<1x64x64xf32> to vector<64x64xf32>
    %c0_3 = arith.constant 0 : index
    %c0_4 = arith.constant 0 : index
    %5 = vector.load %arg6[%c0_3, %c0_4] : memref<1x64xf32, #tpu.memory_space<vmem>>, vector<1x64xf32>
    %cst = arith.constant dense<0.000000e+00> : vector<64xf32>
    %6 = vector.multi_reduction <add>, %4, %cst [0] : vector<64x64xf32> to vector<64xf32>
    %7 = vector.shape_cast %6 : vector<64xf32> to vector<1x64xf32>
    %8 = arith.addf %5, %7 : vector<1x64xf32>
    %c0_5 = arith.constant 0 : index
    %c0_6 = arith.constant 0 : index
    %9 = vector.load %arg6[%c0_5, %c0_6] : memref<1x64xf32, #tpu.memory_space<vmem>>, vector<1x64xf32>
    tpu.vector_store %arg6[%c0_5, %c0_6], %8 {strides = array<i32>} : memref<1x64xf32, #tpu.memory_space<vmem>>, vector<1x64xf32>,
    %c0_7 = arith.constant 0 : index
    %c0_8 = arith.constant 0 : index
    %10 = vector.load %arg7[%c0_7, %c0_8] : memref<1x64xf32, #tpu.memory_space<vmem>>, vector<1x64xf32>
    %11 = arith.mulf %4, %4 : vector<64x64xf32>
    %cst_9 = arith.constant dense<0.000000e+00> : vector<64xf32>
    %12 = vector.multi_reduction <add>, %11, %cst_9 [0] : vector<64x64xf32> to vector<64xf32>
    %13 = vector.shape_cast %12 : vector<64xf32> to vector<1x64xf32>
    %14 = arith.addf %10, %13 : vector<1x64xf32>
    %c0_10 = arith.constant 0 : index
    %c0_11 = arith.constant 0 : index
    %15 = vector.load %arg7[%c0_10, %c0_11] : memref<1x64xf32, #tpu.memory_space<vmem>>, vector<1x64xf32>
    tpu.vector_store %arg7[%c0_10, %c0_11], %14 {strides = array<i32>} : memref<1x64xf32, #tpu.memory_space<vmem>>, vector<1x64xf32>,
    %c0_i32_12 = arith.constant 0 : i32
    %16 = arith.cmpi eq, %arg1, %c0_i32_12 : i32
    %17 = arith.extui %16 : i1 to i32
    %c0_i32_13 = arith.constant 0 : i32
    %18 = arith.cmpi ne, %17, %c0_i32_13 : i32
    scf.if %18 {
      %c0_14 = arith.constant 0 : index
      %c0_15 = arith.constant 0 : index
      %19 = vector.load %arg3[%c0_14, %c0_15] : memref<64x32xf32, #tpu.memory_space<vmem>>, vector<64x32xf32>
      %c0_16 = arith.constant 0 : index
      %c0_17 = arith.constant 0 : index
      %20 = vector.load %arg4[%c0_16, %c0_17] : memref<32x64xf32, #tpu.memory_space<vmem>>, vector<32x64xf32>
      %c0_18 = arith.constant 0 : index
      %c0_19 = arith.constant 0 : index
      %21 = vector.load %arg6[%c0_18, %c0_19] : memref<1x64xf32, #tpu.memory_space<vmem>>, vector<1x64xf32>
      %cst_20 = arith.constant dense<0.000000e+00> : vector<1x32xf32>
      %22 = tpu.matmul %21, %19, %cst_20 {dimension_numbers = #tpu.dot_dimension_numbers<[1], [0], [0], [1], [0, 0, 1, 1], [], []>} : vector<1x64xf32>, vector<64x32xf32>, vector<1x32xf32> -> vector<1x32xf32>
      %c0_21 = arith.constant 0 : index
      %c0_22 = arith.constant 0 : index
      %23 = vector.load %arg7[%c0_21, %c0_22] : memref<1x64xf32, #tpu.memory_space<vmem>>, vector<1x64xf32>
      %cst_23 = arith.constant dense<0.000000e+00> : vector<1x32xf32>
      %24 = tpu.matmul %23, %19, %cst_23 {dimension_numbers = #tpu.dot_dimension_numbers<[1], [0], [0], [1], [0, 0, 1, 1], [], []>} : vector<1x64xf32>, vector<64x32xf32>, vector<1x32xf32> -> vector<1x32xf32>
      %cst_24 = arith.constant 7.812500e-03 : f32
      %25 = vector.broadcast %cst_24 : f32 to vector<1x32xf32>
      %26 = arith.mulf %22, %25 : vector<1x32xf32>
      %cst_25 = arith.constant 7.812500e-03 : f32
      %27 = vector.broadcast %cst_25 : f32 to vector<1x32xf32>
      %28 = arith.mulf %24, %27 : vector<1x32xf32>
      %29 = arith.mulf %26, %26 : vector<1x32xf32>
      %30 = arith.subf %28, %29 : vector<1x32xf32>
      %cst_26 = arith.constant 9.99999997E-7 : f32
      %31 = vector.broadcast %cst_26 : f32 to vector<1x32xf32>
      %32 = arith.addf %30, %31 : vector<1x32xf32>
      %33 = math.rsqrt %32 : vector<1x32xf32>
      %cst_27 = arith.constant dense<0.000000e+00> : vector<1x64xf32>
      %34 = tpu.matmul %26, %20, %cst_27 {dimension_numbers = #tpu.dot_dimension_numbers<[1], [0], [0], [1], [0, 0, 1, 1], [], []>} : vector<1x32xf32>, vector<32x64xf32>, vector<1x64xf32> -> vector<1x64xf32>
      %cst_28 = arith.constant dense<0.000000e+00> : vector<1x64xf32>
      %35 = tpu.matmul %33, %20, %cst_28 {dimension_numbers = #tpu.dot_dimension_numbers<[1], [0], [0], [1], [0, 0, 1, 1], [], []>} : vector<1x32xf32>, vector<32x64xf32>, vector<1x64xf32> -> vector<1x64xf32>
      %36 = tpu.concatenate %34, %35 in 0 : vector<1x64xf32>, vector<1x64xf32> -> vector<2x64xf32>
      %c0_29 = arith.constant 0 : index
      %c0_30 = arith.constant 0 : index
      %c0_31 = arith.constant 0 : index
      %37 = vector.load %arg5[%c0_29, %c0_30, %c0_31] : memref<1x2x64xf32, #tpu.memory_space<vmem>>, vector<1x2x64xf32>
      %38 = vector.shape_cast %37 : vector<1x2x64xf32> to vector<2x64xf32>
      %39 = vector.shape_cast %36 : vector<2x64xf32> to vector<1x2x64xf32>
      tpu.vector_store %arg5[%c0_29, %c0_30, %c0_31], %39 {strides = array<i32>} : memref<1x2x64xf32, #tpu.memory_space<vmem>>, vector<1x2x64xf32>,
    } else {
    }
    return
  }
  func.func @transform_0(%arg0: i32, %arg1: i32) -> (i32, i32, i32) {
    %c0_i32 = arith.constant 0 : i32
    %c0_i32_0 = arith.constant 0 : i32
    return %arg0, %arg1, %c0_i32 : i32, i32, i32
  }
  func.func @transform_1(%arg0: i32, %arg1: i32) -> (i32, i32) {
    %c0_i32 = arith.constant 0 : i32
    %c0_i32_0 = arith.constant 0 : i32
    %c0_i32_1 = arith.constant 0 : i32
    return %c0_i32, %c0_i32_0 : i32, i32
  }
  func.func @transform_2(%arg0: i32, %arg1: i32) -> (i32, i32) {
    %c0_i32 = arith.constant 0 : i32
    %c0_i32_0 = arith.constant 0 : i32
    %c0_i32_1 = arith.constant 0 : i32
    return %c0_i32, %c0_i32_0 : i32, i32
  }
  func.func @transform_3(%arg0: i32, %arg1: i32) -> (i32, i32, i32) {
    %c0_i32 = arith.constant 0 : i32
    %c0_i32_0 = arith.constant 0 : i32
    %c0_i32_1 = arith.constant 0 : i32
    return %arg0, %c0_i32, %c0_i32_0 : i32, i32, i32
  }
}

module attributes {stable_mosaic.version = 11 : i64} {
  func.func @_proj_residual_kernel(%arg0: i32, %arg1: memref<64x64xbf16, #tpu.memory_space<vmem>>, %arg2: memref<64x64xbf16, #tpu.memory_space<vmem>>, %arg3: memref<1x64xf32, #tpu.memory_space<vmem>>, %arg4: memref<64x64xf32, #tpu.memory_space<vmem>>, %arg5: memref<64x64xf32, #tpu.memory_space<vmem>>) attributes {dimension_semantics = [#tpu.dimension_semantics<parallel>], iteration_bounds = array<i64: 2>, scalar_prefetch = 0 : i64, scratch_operands = 0 : i64, tpu.core_type = #tpu.core_type<tc>, window_params = [{transform_indices = @transform_0, window_bounds = array<i64: 64, 64>}, {pipeline_mode = #tpu.pipeline_mode<synchronous>, transform_indices = @transform_1, window_bounds = array<i64: 64, 64>}, {pipeline_mode = #tpu.pipeline_mode<synchronous>, transform_indices = @transform_2, window_bounds = array<i64: 1, 64>}, {transform_indices = @transform_3, window_bounds = array<i64: 64, 64>}, {transform_indices = @transform_4, window_bounds = array<i64: 64, 64>}]} {
    %c0 = arith.constant 0 : index
    %c0_0 = arith.constant 0 : index
    %0 = vector.load %arg1[%c0, %c0_0] : memref<64x64xbf16, #tpu.memory_space<vmem>>, vector<64x64xbf16>
    %c0_1 = arith.constant 0 : index
    %c0_2 = arith.constant 0 : index
    %1 = vector.load %arg2[%c0_1, %c0_2] : memref<64x64xbf16, #tpu.memory_space<vmem>>, vector<64x64xbf16>
    %cst = arith.constant dense<0.000000e+00> : vector<64x64xf32>
    %2 = tpu.matmul %0, %1, %cst {dimension_numbers = #tpu.dot_dimension_numbers<[1], [0], [0], [1], [0, 0, 1, 1], [], []>} : vector<64x64xbf16>, vector<64x64xbf16>, vector<64x64xf32> -> vector<64x64xf32>
    %c0_3 = arith.constant 0 : index
    %c0_4 = arith.constant 0 : index
    %3 = vector.load %arg3[%c0_3, %c0_4] : memref<1x64xf32, #tpu.memory_space<vmem>>, vector<1x64xf32>
    %4 = vector.broadcast %3 : vector<1x64xf32> to vector<64x64xf32>
    %5 = arith.addf %2, %4 : vector<64x64xf32>
    %c0_5 = arith.constant 0 : index
    %c0_6 = arith.constant 0 : index
    %6 = vector.load %arg4[%c0_5, %c0_6] : memref<64x64xf32, #tpu.memory_space<vmem>>, vector<64x64xf32>
    %7 = arith.addf %5, %6 : vector<64x64xf32>
    %c0_7 = arith.constant 0 : index
    %c0_8 = arith.constant 0 : index
    %8 = vector.load %arg5[%c0_7, %c0_8] : memref<64x64xf32, #tpu.memory_space<vmem>>, vector<64x64xf32>
    tpu.vector_store %arg5[%c0_7, %c0_8], %7 {strides = array<i32>} : memref<64x64xf32, #tpu.memory_space<vmem>>, vector<64x64xf32>,
    return
  }
  func.func @transform_0(%arg0: i32) -> (i32, i32) {
    %c0_i32 = arith.constant 0 : i32
    %c0_i32_0 = arith.constant 0 : i32
    return %arg0, %c0_i32 : i32, i32
  }
  func.func @transform_1(%arg0: i32) -> (i32, i32) {
    %c0_i32 = arith.constant 0 : i32
    %c0_i32_0 = arith.constant 0 : i32
    %c0_i32_1 = arith.constant 0 : i32
    return %c0_i32, %c0_i32_0 : i32, i32
  }
  func.func @transform_2(%arg0: i32) -> (i32, i32) {
    %c0_i32 = arith.constant 0 : i32
    %c0_i32_0 = arith.constant 0 : i32
    %c0_i32_1 = arith.constant 0 : i32
    return %c0_i32, %c0_i32_0 : i32, i32
  }
  func.func @transform_3(%arg0: i32) -> (i32, i32) {
    %c0_i32 = arith.constant 0 : i32
    %c0_i32_0 = arith.constant 0 : i32
    return %arg0, %c0_i32 : i32, i32
  }
  func.func @transform_4(%arg0: i32) -> (i32, i32) {
    %c0_i32 = arith.constant 0 : i32
    %c0_i32_0 = arith.constant 0 : i32
    return %arg0, %c0_i32 : i32, i32
  }
}

module attributes {stable_mosaic.version = 11 : i64} {
  func.func @_flash_attn_kernel(%arg0: i32, %arg1: i32, %arg2: i32, %arg3: memref<1x64x64xbf16, #tpu.memory_space<vmem>>, %arg4: memref<1x64x64xbf16, #tpu.memory_space<vmem>>, %arg5: memref<1x64x64xbf16, #tpu.memory_space<vmem>>, %arg6: memref<1x64x64xbf16, #tpu.memory_space<vmem>>, %arg7: memref<64x1xf32, #tpu.memory_space<vmem>>, %arg8: memref<64x1xf32, #tpu.memory_space<vmem>>, %arg9: memref<64x64xf32, #tpu.memory_space<vmem>>) attributes {dimension_semantics = [#tpu.dimension_semantics<parallel>, #tpu.dimension_semantics<parallel>, #tpu.dimension_semantics<arbitrary>], iteration_bounds = array<i64: 2, 1, 1>, scalar_prefetch = 0 : i64, scratch_operands = 3 : i64, tpu.core_type = #tpu.core_type<tc>, window_params = [{transform_indices = @transform_0, window_bounds = array<i64: 1, 64, 64>}, {transform_indices = @transform_1, window_bounds = array<i64: 1, 64, 64>}, {transform_indices = @transform_2, window_bounds = array<i64: 1, 64, 64>}, {transform_indices = @transform_3, window_bounds = array<i64: 1, 64, 64>}]} {
    %c0_i32 = arith.constant 0 : i32
    %0 = arith.cmpi eq, %arg2, %c0_i32 : i32
    %1 = arith.extui %0 : i1 to i32
    %c0_i32_0 = arith.constant 0 : i32
    %2 = arith.cmpi ne, %1, %c0_i32_0 : i32
    scf.if %2 {
      %cst_26 = arith.constant 0xFF800000 : f32
      %37 = vector.broadcast %cst_26 : f32 to vector<64x1xf32>
      %c0_27 = arith.constant 0 : index
      %c0_28 = arith.constant 0 : index
      %38 = vector.load %arg7[%c0_27, %c0_28] : memref<64x1xf32, #tpu.memory_space<vmem>>, vector<64x1xf32>
      tpu.vector_store %arg7[%c0_27, %c0_28], %37 {strides = array<i32>} : memref<64x1xf32, #tpu.memory_space<vmem>>, vector<64x1xf32>,
      %cst_29 = arith.constant 0.000000e+00 : f32
      %39 = vector.broadcast %cst_29 : f32 to vector<64x1xf32>
      %c0_30 = arith.constant 0 : index
      %c0_31 = arith.constant 0 : index
      %40 = vector.load %arg8[%c0_30, %c0_31] : memref<64x1xf32, #tpu.memory_space<vmem>>, vector<64x1xf32>
      tpu.vector_store %arg8[%c0_30, %c0_31], %39 {strides = array<i32>} : memref<64x1xf32, #tpu.memory_space<vmem>>, vector<64x1xf32>,
      %cst_32 = arith.constant 0.000000e+00 : f32
      %41 = vector.broadcast %cst_32 : f32 to vector<64x64xf32>
      %c0_33 = arith.constant 0 : index
      %c0_34 = arith.constant 0 : index
      %42 = vector.load %arg9[%c0_33, %c0_34] : memref<64x64xf32, #tpu.memory_space<vmem>>, vector<64x64xf32>
      tpu.vector_store %arg9[%c0_33, %c0_34], %41 {strides = array<i32>} : memref<64x64xf32, #tpu.memory_space<vmem>>, vector<64x64xf32>,
    } else {
    }
    %c0 = arith.constant 0 : index
    %c0_1 = arith.constant 0 : index
    %c0_2 = arith.constant 0 : index
    %3 = vector.load %arg3[%c0, %c0_1, %c0_2] : memref<1x64x64xbf16, #tpu.memory_space<vmem>>, vector<1x64x64xbf16>
    %4 = vector.shape_cast %3 : vector<1x64x64xbf16> to vector<64x64xbf16>
    %c0_3 = arith.constant 0 : index
    %c0_4 = arith.constant 0 : index
    %c0_5 = arith.constant 0 : index
    %5 = vector.load %arg4[%c0_3, %c0_4, %c0_5] : memref<1x64x64xbf16, #tpu.memory_space<vmem>>, vector<1x64x64xbf16>
    %6 = vector.shape_cast %5 : vector<1x64x64xbf16> to vector<64x64xbf16>
    %c0_6 = arith.constant 0 : index
    %c0_7 = arith.constant 0 : index
    %c0_8 = arith.constant 0 : index
    %7 = vector.load %arg5[%c0_6, %c0_7, %c0_8] : memref<1x64x64xbf16, #tpu.memory_space<vmem>>, vector<1x64x64xbf16>
    %8 = vector.shape_cast %7 : vector<1x64x64xbf16> to vector<64x64xbf16>
    %9 = tpu.transpose %6, [1, 0] : vector<64x64xbf16> -> vector<64x64xbf16>
    %cst = arith.constant dense<0.000000e+00> : vector<64x64xf32>
    %10 = tpu.matmul %4, %9, %cst {dimension_numbers = #tpu.dot_dimension_numbers<[1], [0], [0], [1], [0, 0, 1, 1], [], []>} : vector<64x64xbf16>, vector<64x64xbf16>, vector<64x64xf32> -> vector<64x64xf32>
    %c0_9 = arith.constant 0 : index
    %c0_10 = arith.constant 0 : index
    %11 = vector.load %arg7[%c0_9, %c0_10] : memref<64x1xf32, #tpu.memory_space<vmem>>, vector<64x1xf32>
    %cst_11 = arith.constant dense<0xFF800000> : vector<64xf32>
    %12 = vector.multi_reduction <maximumf>, %10, %cst_11 [1] : vector<64x64xf32> to vector<64xf32>
    %13 = vector.shape_cast %12 : vector<64xf32> to vector<64x1xf32>
    %14 = arith.maximumf %11, %13 : vector<64x1xf32>
    %15 = arith.subf %11, %14 : vector<64x1xf32>
    %16 = math.exp %15 : vector<64x1xf32>
    %17 = vector.broadcast %14 : vector<64x1xf32> to vector<64x64xf32>
    %18 = arith.subf %10, %17 : vector<64x64xf32>
    %19 = math.exp %18 : vector<64x64xf32>
    %c0_12 = arith.constant 0 : index
    %c0_13 = arith.constant 0 : index
    %20 = vector.load %arg8[%c0_12, %c0_13] : memref<64x1xf32, #tpu.memory_space<vmem>>, vector<64x1xf32>
    %21 = arith.mulf %16, %20 : vector<64x1xf32>
    %cst_14 = arith.constant dense<0.000000e+00> : vector<64xf32>
    %22 = vector.multi_reduction <add>, %19, %cst_14 [1] : vector<64x64xf32> to vector<64xf32>
    %23 = vector.shape_cast %22 : vector<64xf32> to vector<64x1xf32>
    %24 = arith.addf %21, %23 : vector<64x1xf32>
    %c0_15 = arith.constant 0 : index
    %c0_16 = arith.constant 0 : index
    %25 = vector.load %arg8[%c0_15, %c0_16] : memref<64x1xf32, #tpu.memory_space<vmem>>, vector<64x1xf32>
    tpu.vector_store %arg8[%c0_15, %c0_16], %24 {strides = array<i32>} : memref<64x1xf32, #tpu.memory_space<vmem>>, vector<64x1xf32>,
    %c0_17 = arith.constant 0 : index
    %c0_18 = arith.constant 0 : index
    %26 = vector.load %arg9[%c0_17, %c0_18] : memref<64x64xf32, #tpu.memory_space<vmem>>, vector<64x64xf32>
    %27 = vector.broadcast %16 : vector<64x1xf32> to vector<64x64xf32>
    %28 = arith.mulf %27, %26 : vector<64x64xf32>
    %29 = arith.truncf %19 : vector<64x64xf32> to vector<64x64xbf16>
    %cst_19 = arith.constant dense<0.000000e+00> : vector<64x64xf32>
    %30 = tpu.matmul %29, %8, %cst_19 {dimension_numbers = #tpu.dot_dimension_numbers<[1], [0], [0], [1], [0, 0, 1, 1], [], []>} : vector<64x64xbf16>, vector<64x64xbf16>, vector<64x64xf32> -> vector<64x64xf32>
    %31 = arith.addf %28, %30 : vector<64x64xf32>
    %c0_20 = arith.constant 0 : index
    %c0_21 = arith.constant 0 : index
    %32 = vector.load %arg9[%c0_20, %c0_21] : memref<64x64xf32, #tpu.memory_space<vmem>>, vector<64x64xf32>
    tpu.vector_store %arg9[%c0_20, %c0_21], %31 {strides = array<i32>} : memref<64x64xf32, #tpu.memory_space<vmem>>, vector<64x64xf32>,
    %c0_22 = arith.constant 0 : index
    %c0_23 = arith.constant 0 : index
    %33 = vector.load %arg7[%c0_22, %c0_23] : memref<64x1xf32, #tpu.memory_space<vmem>>, vector<64x1xf32>
    tpu.vector_store %arg7[%c0_22, %c0_23], %14 {strides = array<i32>} : memref<64x1xf32, #tpu.memory_space<vmem>>, vector<64x1xf32>,
    %c0_i32_24 = arith.constant 0 : i32
    %34 = arith.cmpi eq, %arg2, %c0_i32_24 : i32
    %35 = arith.extui %34 : i1 to i32
    %c0_i32_25 = arith.constant 0 : i32
    %36 = arith.cmpi ne, %35, %c0_i32_25 : i32
    scf.if %36 {
      %c0_26 = arith.constant 0 : index
      %c0_27 = arith.constant 0 : index
      %37 = vector.load %arg9[%c0_26, %c0_27] : memref<64x64xf32, #tpu.memory_space<vmem>>, vector<64x64xf32>
      %c0_28 = arith.constant 0 : index
      %c0_29 = arith.constant 0 : index
      %38 = vector.load %arg8[%c0_28, %c0_29] : memref<64x1xf32, #tpu.memory_space<vmem>>, vector<64x1xf32>
      %39 = tpu.reciprocal %38 {approx = true} : vector<64x1xf32> -> vector<64x1xf32>
      %40 = vector.broadcast %39 : vector<64x1xf32> to vector<64x64xf32>
      %41 = arith.mulf %37, %40 : vector<64x64xf32>
      %42 = arith.truncf %41 : vector<64x64xf32> to vector<64x64xbf16>
      %c0_30 = arith.constant 0 : index
      %c0_31 = arith.constant 0 : index
      %c0_32 = arith.constant 0 : index
      %43 = vector.load %arg6[%c0_30, %c0_31, %c0_32] : memref<1x64x64xbf16, #tpu.memory_space<vmem>>, vector<1x64x64xbf16>
      %44 = vector.shape_cast %43 : vector<1x64x64xbf16> to vector<64x64xbf16>
      %45 = vector.shape_cast %42 : vector<64x64xbf16> to vector<1x64x64xbf16>
      tpu.vector_store %arg6[%c0_30, %c0_31, %c0_32], %45 {strides = array<i32>} : memref<1x64x64xbf16, #tpu.memory_space<vmem>>, vector<1x64x64xbf16>,
    } else {
    }
    return
  }
  func.func @transform_0(%arg0: i32, %arg1: i32, %arg2: i32) -> (i32, i32, i32) {
    %c0_i32 = arith.constant 0 : i32
    %c0_i32_0 = arith.constant 0 : i32
    return %arg0, %arg1, %c0_i32 : i32, i32, i32
  }
  func.func @transform_1(%arg0: i32, %arg1: i32, %arg2: i32) -> (i32, i32, i32) {
    %c0_i32 = arith.constant 0 : i32
    %c0_i32_0 = arith.constant 0 : i32
    return %arg0, %arg2, %c0_i32 : i32, i32, i32
  }
  func.func @transform_2(%arg0: i32, %arg1: i32, %arg2: i32) -> (i32, i32, i32) {
    %c0_i32 = arith.constant 0 : i32
    %c0_i32_0 = arith.constant 0 : i32
    return %arg0, %arg2, %c0_i32 : i32, i32, i32
  }
  func.func @transform_3(%arg0: i32, %arg1: i32, %arg2: i32) -> (i32, i32, i32) {
    %c0_i32 = arith.constant 0 : i32
    %c0_i32_0 = arith.constant 0 : i32
    return %arg0, %arg1, %c0_i32 : i32, i32, i32
  }
}

module attributes {stable_mosaic.version = 11 : i64} {
  func.func @_gn_qkv_kernel(%arg0: i32, %arg1: i32, %arg2: memref<1x64x64xf32, #tpu.memory_space<vmem>>, %arg3: memref<1x2x64xf32, #tpu.memory_space<vmem>>, %arg4: memref<1x64xf32, #tpu.memory_space<vmem>>, %arg5: memref<1x64xf32, #tpu.memory_space<vmem>>, %arg6: memref<64x192xbf16, #tpu.memory_space<vmem>>, %arg7: memref<1x192xf32, #tpu.memory_space<vmem>>, %arg8: memref<1x64x64xbf16, #tpu.memory_space<vmem>>, %arg9: memref<1x64x64xbf16, #tpu.memory_space<vmem>>, %arg10: memref<1x64x64xbf16, #tpu.memory_space<vmem>>) attributes {dimension_semantics = [#tpu.dimension_semantics<parallel>, #tpu.dimension_semantics<parallel>], iteration_bounds = array<i64: 2, 1>, scalar_prefetch = 0 : i64, scratch_operands = 0 : i64, tpu.core_type = #tpu.core_type<tc>, window_params = [{transform_indices = @transform_0, window_bounds = array<i64: 1, 64, 64>}, {transform_indices = @transform_1, window_bounds = array<i64: 1, 2, 64>}, {pipeline_mode = #tpu.pipeline_mode<synchronous>, transform_indices = @transform_2, window_bounds = array<i64: 1, 64>}, {pipeline_mode = #tpu.pipeline_mode<synchronous>, transform_indices = @transform_3, window_bounds = array<i64: 1, 64>}, {pipeline_mode = #tpu.pipeline_mode<synchronous>, transform_indices = @transform_4, window_bounds = array<i64: 64, 192>}, {pipeline_mode = #tpu.pipeline_mode<synchronous>, transform_indices = @transform_5, window_bounds = array<i64: 1, 192>}, {transform_indices = @transform_6, window_bounds = array<i64: 1, 64, 64>}, {transform_indices = @transform_7, window_bounds = array<i64: 1, 64, 64>}, {transform_indices = @transform_8, window_bounds = array<i64: 1, 64, 64>}]} {
    %c0 = arith.constant 0 : index
    %c0_0 = arith.constant 0 : index
    %c0_1 = arith.constant 0 : index
    %0 = vector.load %arg2[%c0, %c0_0, %c0_1] : memref<1x64x64xf32, #tpu.memory_space<vmem>>, vector<1x64x64xf32>
    %1 = vector.shape_cast %0 : vector<1x64x64xf32> to vector<64x64xf32>
    %c0_2 = arith.constant 0 : index
    %c0_3 = arith.constant 0 : index
    %c0_4 = arith.constant 0 : index
    %2 = vector.load %arg3[%c0_2, %c0_3, %c0_4] : memref<1x2x64xf32, #tpu.memory_space<vmem>>, vector<1x2x64xf32>
    %3 = vector.shape_cast %2 : vector<1x2x64xf32> to vector<2x64xf32>
    %4 = vector.extract_strided_slice %3 {offsets = [0, 0], sizes = [1, 64], strides = [1, 1]} : vector<2x64xf32> to vector<1x64xf32>
    %5 = vector.broadcast %4 : vector<1x64xf32> to vector<64x64xf32>
    %6 = arith.subf %1, %5 : vector<64x64xf32>
    %7 = vector.extract_strided_slice %3 {offsets = [1, 0], sizes = [1, 64], strides = [1, 1]} : vector<2x64xf32> to vector<1x64xf32>
    %8 = vector.broadcast %7 : vector<1x64xf32> to vector<64x64xf32>
    %9 = arith.mulf %6, %8 : vector<64x64xf32>
    %c0_5 = arith.constant 0 : index
    %c0_6 = arith.constant 0 : index
    %10 = vector.load %arg4[%c0_5, %c0_6] : memref<1x64xf32, #tpu.memory_space<vmem>>, vector<1x64xf32>
    %11 = vector.broadcast %10 : vector<1x64xf32> to vector<64x64xf32>
    %12 = arith.mulf %9, %11 : vector<64x64xf32>
    %c0_7 = arith.constant 0 : index
    %c0_8 = arith.constant 0 : index
    %13 = vector.load %arg5[%c0_7, %c0_8] : memref<1x64xf32, #tpu.memory_space<vmem>>, vector<1x64xf32>
    %14 = vector.broadcast %13 : vector<1x64xf32> to vector<64x64xf32>
    %15 = arith.addf %12, %14 : vector<64x64xf32>
    %16 = arith.truncf %15 : vector<64x64xf32> to vector<64x64xbf16>
    %c0_9 = arith.constant 0 : index
    %c0_10 = arith.constant 0 : index
    %17 = vector.load %arg6[%c0_9, %c0_10] : memref<64x192xbf16, #tpu.memory_space<vmem>>, vector<64x192xbf16>
    %cst = arith.constant dense<0.000000e+00> : vector<64x192xf32>
    %18 = tpu.matmul %16, %17, %cst {dimension_numbers = #tpu.dot_dimension_numbers<[1], [0], [0], [1], [0, 0, 1, 1], [], []>} : vector<64x64xbf16>, vector<64x192xbf16>, vector<64x192xf32> -> vector<64x192xf32>
    %c0_11 = arith.constant 0 : index
    %c0_12 = arith.constant 0 : index
    %19 = vector.load %arg7[%c0_11, %c0_12] : memref<1x192xf32, #tpu.memory_space<vmem>>, vector<1x192xf32>
    %20 = vector.broadcast %19 : vector<1x192xf32> to vector<64x192xf32>
    %21 = arith.addf %18, %20 : vector<64x192xf32>
    %22 = vector.extract_strided_slice %21 {offsets = [0, 0], sizes = [64, 64], strides = [1, 1]} : vector<64x192xf32> to vector<64x64xf32>
    %23 = arith.truncf %22 : vector<64x64xf32> to vector<64x64xbf16>
    %c0_13 = arith.constant 0 : index
    %c0_14 = arith.constant 0 : index
    %c0_15 = arith.constant 0 : index
    %24 = vector.load %arg8[%c0_13, %c0_14, %c0_15] : memref<1x64x64xbf16, #tpu.memory_space<vmem>>, vector<1x64x64xbf16>
    %25 = vector.shape_cast %24 : vector<1x64x64xbf16> to vector<64x64xbf16>
    %26 = vector.shape_cast %23 : vector<64x64xbf16> to vector<1x64x64xbf16>
    tpu.vector_store %arg8[%c0_13, %c0_14, %c0_15], %26 {strides = array<i32>} : memref<1x64x64xbf16, #tpu.memory_space<vmem>>, vector<1x64x64xbf16>,
    %27 = vector.extract_strided_slice %21 {offsets = [0, 64], sizes = [64, 64], strides = [1, 1]} : vector<64x192xf32> to vector<64x64xf32>
    %28 = arith.truncf %27 : vector<64x64xf32> to vector<64x64xbf16>
    %c0_16 = arith.constant 0 : index
    %c0_17 = arith.constant 0 : index
    %c0_18 = arith.constant 0 : index
    %29 = vector.load %arg9[%c0_16, %c0_17, %c0_18] : memref<1x64x64xbf16, #tpu.memory_space<vmem>>, vector<1x64x64xbf16>
    %30 = vector.shape_cast %29 : vector<1x64x64xbf16> to vector<64x64xbf16>
    %31 = vector.shape_cast %28 : vector<64x64xbf16> to vector<1x64x64xbf16>
    tpu.vector_store %arg9[%c0_16, %c0_17, %c0_18], %31 {strides = array<i32>} : memref<1x64x64xbf16, #tpu.memory_space<vmem>>, vector<1x64x64xbf16>,
    %32 = vector.extract_strided_slice %21 {offsets = [0, 128], sizes = [64, 64], strides = [1, 1]} : vector<64x192xf32> to vector<64x64xf32>
    %33 = arith.truncf %32 : vector<64x64xf32> to vector<64x64xbf16>
    %c0_19 = arith.constant 0 : index
    %c0_20 = arith.constant 0 : index
    %c0_21 = arith.constant 0 : index
    %34 = vector.load %arg10[%c0_19, %c0_20, %c0_21] : memref<1x64x64xbf16, #tpu.memory_space<vmem>>, vector<1x64x64xbf16>
    %35 = vector.shape_cast %34 : vector<1x64x64xbf16> to vector<64x64xbf16>
    %36 = vector.shape_cast %33 : vector<64x64xbf16> to vector<1x64x64xbf16>
    tpu.vector_store %arg10[%c0_19, %c0_20, %c0_21], %36 {strides = array<i32>} : memref<1x64x64xbf16, #tpu.memory_space<vmem>>, vector<1x64x64xbf16>,
    return
  }
  func.func @transform_0(%arg0: i32, %arg1: i32) -> (i32, i32, i32) {
    %c0_i32 = arith.constant 0 : i32
    %c0_i32_0 = arith.constant 0 : i32
    return %arg0, %arg1, %c0_i32 : i32, i32, i32
  }
  func.func @transform_1(%arg0: i32, %arg1: i32) -> (i32, i32, i32) {
    %c0_i32 = arith.constant 0 : i32
    %c0_i32_0 = arith.constant 0 : i32
    %c0_i32_1 = arith.constant 0 : i32
    return %arg0, %c0_i32, %c0_i32_0 : i32, i32, i32
  }
  func.func @transform_2(%arg0: i32, %arg1: i32) -> (i32, i32) {
    %c0_i32 = arith.constant 0 : i32
    %c0_i32_0 = arith.constant 0 : i32
    %c0_i32_1 = arith.constant 0 : i32
    return %c0_i32, %c0_i32_0 : i32, i32
  }
  func.func @transform_3(%arg0: i32, %arg1: i32) -> (i32, i32) {
    %c0_i32 = arith.constant 0 : i32
    %c0_i32_0 = arith.constant 0 : i32
    %c0_i32_1 = arith.constant 0 : i32
    return %c0_i32, %c0_i32_0 : i32, i32
  }
  func.func @transform_4(%arg0: i32, %arg1: i32) -> (i32, i32) {
    %c0_i32 = arith.constant 0 : i32
    %c0_i32_0 = arith.constant 0 : i32
    %c0_i32_1 = arith.constant 0 : i32
    return %c0_i32, %c0_i32_0 : i32, i32
  }
  func.func @transform_5(%arg0: i32, %arg1: i32) -> (i32, i32) {
    %c0_i32 = arith.constant 0 : i32
    %c0_i32_0 = arith.constant 0 : i32
    %c0_i32_1 = arith.constant 0 : i32
    return %c0_i32, %c0_i32_0 : i32, i32
  }
  func.func @transform_6(%arg0: i32, %arg1: i32) -> (i32, i32, i32) {
    %c0_i32 = arith.constant 0 : i32
    %c0_i32_0 = arith.constant 0 : i32
    return %arg0, %arg1, %c0_i32 : i32, i32, i32
  }
  func.func @transform_7(%arg0: i32, %arg1: i32) -> (i32, i32, i32) {
    %c0_i32 = arith.constant 0 : i32
    %c0_i32_0 = arith.constant 0 : i32
    return %arg0, %arg1, %c0_i32 : i32, i32, i32
  }
  func.func @transform_8(%arg0: i32, %arg1: i32) -> (i32, i32, i32) {
    %c0_i32 = arith.constant 0 : i32
    %c0_i32_0 = arith.constant 0 : i32
    return %arg0, %arg1, %c0_i32 : i32, i32, i32
  }
}

</mosaic_0001>

<bundles_post_ra>
// kernel: _lambda_.7
= control target key start
LH: loop header
LB: loop body
LE: loop exit
PB: predicated region body
PF: predicated region fallthrough
CT: control target
= control target key end

     0   :  { %9 = vsyncpa [#allocation3], 0  ;;  %s827_s0 = inlined_call_operand.vmem [shape: bf16[128,64], index: 0, kind: input, shape index: {}]   ;;  %s828_s1 = inlined_call_operand.vmem [shape: bf16[64,64], index: 1, kind: input, shape index: {}]   ;;  %s829_s2 = inlined_call_operand.vmem [shape: f32[1,64], index: 2, kind: input, shape index: {}]   ;;  %s830_s3 = inlined_call_operand.vmem [shape: f32[128,64], index: 3, kind: input, shape index: {}]   ;;  %s831_s4 = inlined_call_operand.hbm [shape: f32[128,64], index: 4, kind: output, shape index: {}]  }
   0x1   :  { %11 = vsyncpa [#allocation3 + $0x1], 0  ;;  %s678_s15 = smov 0   ;;  %s680_s16 = smov 0  }
   0x2   :  { %s682_s17 = smov 0   ;;  %s684_s18 = smov 0  }
   0x3 LB: > { %s699_s19 = sadd.s32 4294967295, %s648_s18   ;;  %s479_s20 = sadd.s32 4294967294, %s648_s18   ;;  %s648_s18 = sphi %s684_s18, %s837_s18   ;;  %s644_s17 = sphi %s682_s17, %s836_s17   ;;  %s640_s16 = sphi %s680_s16, %s835_s16   ;;  %s636_s15 = sphi %s678_s15, %s834_s15  }
   0x4   : > { %s703_s21 = sadd.s32 1, %s648_s18   ;;  %s118_s22 = sadd.s32 1, %s644_s17 }
   0x5   : > { %s115_s23 = ssub.s32 %s648_s18, %s703_s21  ;;  %p128_p0 = scmp.ne.s32.totalorder %s644_s17, %s640_s16 }
   0x6   : > { %p116_p1 = scmp.eq.s32.totalorder %s115_s23, 0  ;;  %p129_p2 = scmp.eq.s32.totalorder %s699_s19, 1 }
   0x7   : > { %p134_p3 = scmp.ne.s32.totalorder %s640_s16, %s636_s15  ;;  %p135_p4 = scmp.eq.s32.totalorder %s479_s20, 1 }
   0x8   : > { %s714_s24 = scalar_select %p116_p1, %s644_s17, %s118_s22  }
   0x9   : > { %p716_p5 = por %p129_p2, %p128_p0  ;;  %p720_p6 = por %p135_p4, %p134_p3 }
   0xa   : > { %p482_p7 = scmp.ge.s32.totalorder %s648_s18, 1  ;;  %p177_p8 = scmp.lt.s32.totalorder %s648_s18, 3 }
   0xc   : > { %p178_p9 = pnand %p482_p7, %p177_p8 }
   0xd   : > { %s484_s29 = sshll.u32 (!%p178_p9), %s699_s19, 3  ;;  %s205_s20 = sand.u32 (!%p178_p9), 1, %s640_s16  }
   0xe   : > { %181 = sbr.rel (%p178_p9) target bundleno = 253 (0xfd), region = 36  ;;  %p209_p10 = scmp.lt.s32.totalorder (!%p178_p9), %s484_s29, 15 }
   0xf   : > { %s483_s5 = sshll.u32 (!%p178_p9), %s205_s20, 6  ;;  %s506_s6 = sshll.u32 (!%p178_p9), %s699_s19, 10 }
  0x10   : > { %s777_s10 = scalar_lea.hbm (!%p178_p9), %s831_s4, %s506_s6  ;;  %s787_s19 = scalar_lea.sflag (!%p178_p9), [#allocation3], %s205_s20 }
  0x11   : > { %s650_s12 = smov (!%p178_p9), [#allocation2]  }
  0x13   : > { %v580_v0 = vld [vmem:[%s828_s1 + $0x18] sm:$0xff]   ;;  %v581_v1 = vld [vmem:[%s828_s1 + $0x10] sm:$0xff]   ;;  %s839_s29 = smov (!%p209_p10, %s484_s29), 15  ;;  %v582_v2 = vld [vmem:[%s828_s1 + $0x8] sm:$0xff]   ;;  %vm289_vm0 = vcmask 523264  }
  0x14   : > { %515 = vmatprep.subr.bf16.mxu0 %v580_v0  ;;  %531 = vmatprep.subr.bf16.mxu1 %v580_v0  ;;  %s485_s8 = sshll.u32 %s839_s29, 2  ;;  %v583_v3 = vld [vmem:[%s828_s1] sm:$0xff]   ;;  %s487_s14 = sshll.u32 %s839_s29, 3 }
  0x15   : > { %516 = vmatpush3.bf16.msra.mxu0 %v580_v0  ;;  %535 = vmatpush3.bf16.msra.mxu1 %v580_v0  ;;  %s212_s13 = scalar_lea.vmem %s827_s0, %s485_s8  ;;  %s754_s27 = scalar_lea.vmem %s830_s3, %s487_s14  ;;  %v488_v8 = vld [vmem:[%s829_s2] ss:$0 sm:$0xff] }
  0x16   : > { %517 = vmatprep.subr.bf16.mxu0 %v581_v1  ;;  %532 = vmatprep.subr.bf16.mxu1 %v581_v1  ;;  %v584_v4 = vld [vmem:[%s212_s13] sm:$0xff]   ;;  %v585_v5 = vld [vmem:[%s212_s13 + $0x10] sm:$0xff]   ;;  %v586_v6 = vld [vmem:[%s212_s13 + $0x8] sm:$0xff]   ;;  %s207_s29 = scalar_lea.vmem [#allocation2], %s483_s5 }
  0x17   : > { %523 = vmatprep.mubr.msk.bf16.mxu0 %vm289_vm0, %v584_v4  ;;  %527 = vmatprep.mubr.msk.bf16.mxu1 %vm289_vm0, %v585_v5  ;;  %v587_v7 = vld [vmem:[%s212_s13 + $0x18] sm:$0xff]   ;;  %v369_v10 = vld [vmem:[%s754_s27 + $0x10] sm:$0xff]  ;;  %v367_v16 = vld [vmem:[%s754_s27] sm:$0xff]  ;;  %s405_s7 = sshll.u32 %s207_s29, 4  ;;  %s592_s13 = sshll.u32 %s650_s12, 4  ;;  %s779_s7 = int_to_ptr.vmem [resolvable:$true] %s405_s7  ;;  %s593_s13 = int_to_ptr.vmem [resolvable:$false] %s592_s13 }
  0x18   : > { %v373_v12 = vld [vmem:[%s754_s27 + $0x30] sm:$0xff]  ;;  %v371_v18 = vld [vmem:[%s754_s27 + $0x20] sm:$0xff]  ;;  %v370_v24 = vld [vmem:[%s754_s27 + $0x18] sm:$0xff]  ;;  %s588_s11 = scalar_lea.vmem %s779_s7, 1024  ;;  %s594_s14 = scalar_lea.vmem %s593_s13, 2048 }
  0x19   : > { %518 = vmatpush3.bf16.msra.mxu0 %v581_v1  ;;  %536 = vmatpush3.bf16.msra.mxu1 %v581_v1  ;;  %v374_v26 = vld [vmem:[%s754_s27 + $0x38] sm:$0xff]  ;;  %v368_v32 = vld [vmem:[%s754_s27 + $0x8] sm:$0xff]  ;;  %p589_p11 = scmp.ne.s32.totalorder %s779_s7, %s588_s11  ;;  %p595_p0 = scmp.lt.s32.totalorder %s779_s7, %s593_s13 }
  0x1a   : > { %519 = vmatprep.subr.bf16.mxu0 %v582_v2  ;;  %533 = vmatprep.subr.bf16.mxu1 %v582_v2  ;;  %v372_v34 = vld [vmem:[%s754_s27 + $0x28] sm:$0xff]  ;;  %p596_p1 = scmp.lt.s32.totalorder %s594_s14, %s588_s11 }
  0x1b   : > { %p590_p12 = pnand %p589_p11, %p716_p5 }
  0x1c   : > { %p597_p2 = por %p596_p1, %p595_p0 }
  0x1d   : > { %520 = vmatpush3.bf16.msra.mxu0 %v582_v2  ;;  %537 = vmatpush3.bf16.msra.mxu1 %v582_v2  ;;  %p591_p13 = pneg %p590_p12 }
  0x1e   : > { %521 = vmatprep.subr.bf16.mxu0 %v583_v3  ;;  %534 = vmatprep.subr.bf16.mxu1 %v583_v3 }
  0x1f   : > { %p598_p3 = pnand %p597_p2, %p591_p13 }
  0x21   : > { %522 = vmatpush3.bf16.msra.mxu0 %v583_v3  ;;  %538 = vmatpush3.bf16.msra.mxu1 %v583_v3 }
  0x24   : > { %524 = vmatmul.mubr.msk.bf16.vlgmr.msra.gmra.mxu0 %vm289_vm0, %v586_v6  ;;  %528 = vmatmul.mubr.msk.bf16.vlgmr.msra.gmra.mxu1 %vm289_vm0, %v587_v7 }
  0xe4   : > { %v525_v9 = vpop.f32.mrf.mxu0  ;;  %v529_v11 = vpop.f32.mrf.mxu1 }
  0xe5   : > { %v345_v13 = vadd.f32 %v525_v9, %v488_v8  ;;  %v361_v14 = vadd.f32 %v529_v11, %v488_v8 }
  0xe6   : > { %v336_v15 = vpop.f32.mrf.mxu0  ;;  %v352_v17 = vpop.f32.mrf.mxu1 }
  0xe7   : > { %v377_v19 = vadd.f32 %v369_v10, %v345_v13  ;;  %v381_v20 = vadd.f32 %v373_v12, %v361_v14  ;;  %v337_v21 = vadd.f32 %v488_v8, %v336_v15  ;;  %v353_v22 = vadd.f32 %v488_v8, %v352_v17 }
  0xe8   : > { %v526_v23 = vpop.f32.mrf.mxu0  ;;  %v530_v25 = vpop.f32.mrf.mxu1 }
  0xe9   : > { %385 = vst.msk [vmem:[%s207_s29 + $0x10] sm:$0xff] %vm289_vm0, %v377_v19  ;;  %389 = vst.msk [vmem:[%s207_s29 + $0x30] sm:$0xff] %vm289_vm0, %v381_v20  ;;  %v375_v27 = vadd.f32 %v367_v16, %v337_v21  ;;  %v379_v28 = vadd.f32 %v371_v18, %v353_v22  ;;  %v348_v29 = vadd.f32 %v526_v23, %v488_v8 }
  0xea   : > { %v364_v30 = vadd.f32 %v530_v25, %v488_v8  ;;  %v339_v31 = vpop.f32.mrf.mxu0  ;;  %v355_v33 = vpop.f32.mrf.mxu1 }
  0xeb   : > { %383 = vst.msk [vmem:[%s207_s29] sm:$0xff] %vm289_vm0, %v375_v27  ;;  %387 = vst.msk [vmem:[%s207_s29 + $0x20] sm:$0xff] %vm289_vm0, %v379_v28  ;;  %v378_v35 = vadd.f32 %v370_v24, %v348_v29  ;;  %v340_v37 = vadd.f32 %v488_v8, %v339_v31  ;;  %v356_v38 = vadd.f32 %v488_v8, %v355_v33 }
  0xec   : > { %v382_v36 = vadd.f32 %v374_v26, %v364_v30 }
  0xed   : > { %386 = vst.msk [vmem:[%s207_s29 + $0x18] sm:$0xff] %vm289_vm0, %v378_v35  ;;  %v376_v39 = vadd.f32 %v368_v32, %v340_v37  ;;  %v380_v40 = vadd.f32 %v372_v34, %v356_v38 }
  0xee   : > { %390 = vst.msk [vmem:[%s207_s29 + $0x38] sm:$0xff] %vm289_vm0, %v382_v36 }
  0xef   : > { %384 = vst.msk [vmem:[%s207_s29 + $0x8] sm:$0xff] %vm289_vm0, %v376_v39  ;;  %388 = vst.msk [vmem:[%s207_s29 + $0x28] sm:$0xff] %vm289_vm0, %v380_v40 }
  0xf0   : > { %601 = shalt.err (!%p598_p3)
}
  0xf1   : > { %s602_s20 = scalar_lea.hbm %s777_s10, 1024  ;;  %s606_s27 = scalar_lea.hbm %s831_s4, 2048 }
  0xf2   : > { %p603_p4 = scmp.ne.s32.totalorder %s777_s10, %s602_s20  ;;  %p607_p9 = scmp.lt.s32.totalorder %s777_s10, %s831_s4 }
  0xf3   : > { %p608_p10 = scmp.lt.s32.totalorder %s606_s27, %s602_s20 }
  0xf4   : > { %p604_p7 = pnand %p603_p4, %p716_p5 }
  0xf5   : > { %p609_p11 = por %p608_p10, %p607_p9 }
  0xf6   : > { %p605_p8 = pneg %p604_p7 }
  0xf8   : > { %p610_p12 = pnand %p609_p11, %p605_p8 }
  0xfa   : > { %613 = shalt.err (!%p610_p12)
}
  0xfb   : > { %s651_s5 = smov 128   ;;  %s652_s29 = smov 8  }
  0xfc   : > { %539 = dma.vmem_to_hbm [thread:$0]  (%p716_p5), %s779_s7, 1024, %s777_s10, %s787_s19, %s651_s5, %s651_s5, %s652_s29  }
  0xfd PF: > { %p545_p13 = scmp.ge.s32.totalorder %s648_s18, 2  ;;  %s420_s6 = sand.u32 1, %s636_s15  }
  0xfe   : > { %s421_s8 = scalar_lea.sflag [#allocation3], %s420_s6 }
  0xff   : > { %p542_p0 = pnand %p545_p13, %p720_p6 }
 0x101   : > { %p543_p1 = pneg %p542_p0 }
 0x103   : > { %631 = dma.done.wait (%p543_p1), %s421_s8, 1024  }
 0x104   : > { %633 = vsyncadd (%p543_p1), %s421_s8, 4294966272  ;;  %p14_p2 = scmp.ge.s32.totalorder %s703_s21, 4   ;;  %s834_s15 = smov %s640_s16 }
 0x105   : > { %s835_s16 = smov %s644_s17  ;;  %s836_s17 = smov %s714_s24 }
 0x106   : > { %s837_s18 = smov %s703_s21  ;;  %16 = sbr.rel (!%p14_p2) target bundleno = 3 (0x3), region = 74 }
 0x10b   :  { %426 = vsyncpa [#allocation3], 1 }
 0x10c   :  { %428 = vsyncpa [#allocation3 + $0x1], 1 }

// kernel: _lambda_.4
= control target key start
LH: loop header
LB: loop body
LE: loop exit
PB: predicated region body
PF: predicated region fallthrough
CT: control target
= control target key end

     0   :  { %8 = vsyncpa [#allocation5], 0  ;;  %s1147_s0 = inlined_call_operand.hbm [shape: f32[2,64,64], index: 0, kind: input, shape index: {}]   ;;  %s1148_s1 = inlined_call_operand.vmem [shape: f32[64,32], index: 1, kind: input, shape index: {}]   ;;  %s1149_s2 = inlined_call_operand.vmem [shape: f32[32,64], index: 2, kind: input, shape index: {}]   ;;  %s1150_s3 = inlined_call_operand.vmem [shape: f32[2,2,64], index: 3, kind: output, shape index: {}]  }
   0x1   :  { %10 = vsyncpa [#allocation5 + $0x1], 0  ;;  %s949_s12 = smov 0   ;;  %s951_s13 = smov 0  }
   0x2   :  { %s953_s14 = smov 0   ;;  %s955_s15 = smov 0  }
   0x3   :  { %s957_s16 = smov 0   ;;  %s959_s17 = smov 0  }
   0x4 LB: > { %s678_s18 = sadd.s32 4294967295, %s922_s17   ;;  %s28_s19 = sadd.s32 1, %s918_s16  ;;  %s922_s17 = sphi %s959_s17, %s16_s17   ;;  %s918_s16 = sphi %s957_s16, %s1158_s16   ;;  %s914_s15 = sphi %s955_s15, %s1157_s15   ;;  %s910_s14 = sphi %s953_s14, %s1156_s14   ;;  %s906_s13 = sphi %s951_s13, %s1155_s13   ;;  %s902_s12 = sphi %s949_s12, %s1154_s12  }
   0x5   : > { %p30_p0 = scmp.ge.s32.totalorder %s28_s19, 2  ;;  %s37_s20 = sadd.s32 1, %s910_s14 }
   0x6   : > { %p44_p1 = scmp.ne.s32.totalorder %s910_s14, %s906_s13  ;;  %p45_p2 = scmp.eq.s32.totalorder %s922_s17, 0 }
   0x7   : > { %s1160_s19 = smov (%p30_p0, %s28_s19), 0  ;;  %p50_p4 = scmp.ne.s32.totalorder %s906_s13, %s902_s12 }
   0x8   : > { %p985_p3 = por %p45_p2, %p44_p1  ;;  %s32_s22 = ssub.s32 %s918_s16, %s1160_s19 }
   0x9   : > { %p51_p5 = scmp.eq.s32.totalorder %s678_s18, 0  ;;  %p35_p6 = scmp.eq.s32.totalorder %s32_s22, 0 }
   0xa   : > { %p789_p8 = scmp.lt.s32.totalorder %s922_s17, 2  ;;  %s148_s25 = sand.u32 1, %s910_s14  }
   0xb   : > { %p992_p7 = por %p51_p5, %p50_p4  ;;  %s694_s26 = sshll.u32 %s918_s16, 10 }
   0xc   : > { %s998_s24 = scalar_select %p35_p6, %s910_s14, %s37_s20  }
   0xd   : > { %s682_s27 = sshll.u32 %s148_s25, 6  ;;  %s160_s30 = scalar_lea.hbm %s1147_s0, %s694_s26 }
   0xe   : > { %s152_s4 = scalar_lea.vmem [#allocation4], %s682_s27  ;;  %p1007_p9 = pnand %p789_p8, %p985_p3 }
   0xf   : > { %s161_s5 = sshll.u32 %s152_s4, 4  ;;  %s149_s7 = scalar_lea.sflag [#allocation5], %s148_s25  ;;  %s162_s5 = int_to_ptr.vmem [resolvable:$true] %s161_s5 }
  0x10   : > { %p846_p10 = pneg %p1007_p9  ;;  %s857_s8 = scalar_lea.vmem %s162_s5, 1024 }
  0x11   : > { %p858_p11 = scmp.ne.s32.totalorder %s162_s5, %s857_s8  ;;  %s924_s9 = smov [#allocation4]  }
  0x12   : > { %s862_s10 = sshll.u32 %s924_s9, 4  ;;  %s863_s10 = int_to_ptr.vmem [resolvable:$false] %s862_s10 }
  0x13   : > { %p860_p12 = pnand %p858_p11, %p846_p10  ;;  %s864_s11 = scalar_lea.vmem %s863_s10, 2048 }
  0x14   : > { %p865_p0 = scmp.lt.s32.totalorder %s162_s5, %s863_s10  ;;  %p866_p1 = scmp.lt.s32.totalorder %s864_s11, %s857_s8 }
  0x15   : > { %p861_p13 = pneg %p860_p12 }
  0x16   : > { %p867_p2 = por %p866_p1, %p865_p0 }
  0x18   : > { %p868_p3 = pnand %p867_p2, %p861_p13 }
  0x1a   : > { %871 = shalt.err (!%p868_p3)
}
  0x1b   : > { %s925_s12 = smov 128   ;;  %s926_s18 = smov 8  }
  0x1c   : > { %788 = dma.hbm_to_vmem [thread:$0]  (!%p1007_p9), %s160_s30, 1024, %s162_s5, %s149_s7, %s925_s12, %s925_s12, %s926_s18  }
  0x1d   : > { %p685_p4 = scmp.ge.s32.totalorder %s922_s17, 1  ;;  %p169_p5 = scmp.lt.s32.totalorder %s922_s17, 3 }
  0x1f   : > { %p170_p6 = pnand %p685_p4, %p169_p5 }
  0x20   : > { %s175_s20 = sand.u32 (!%p170_p6), 1, %s906_s13  }
  0x21   : > { %173 = sbr.rel (%p170_p6) target bundleno = 492 (0x1ec), region = 32  ;;  %s686_s21 = sshll.u32 (!%p170_p6), %s175_s20, 6 }
  0x22   : > { %s176_s22 = scalar_lea.sflag (!%p170_p6), [#allocation5], %s175_s20  ;;  %s1018_s25 = scalar_lea.vmem (!%p170_p6), [#allocation4], %s686_s21 }
  0x26   : > { %897 = dma.done.wait (%p992_p7), %s176_s22, 1024  }
  0x27   : > { %899 = vsyncadd (%p992_p7), %s176_s22, 4294966272  ;;  %vm210_vm0 = vcmask 516096   ;;  %v927_v0 = vmov 0.0   ;;  %vm928_vm1 = vmmov 0   ;;  %v289_v1 = vld [vmem:[%s1148_s1 + $0x38] sm:$0xff]  ;;  %v288_v2 = vld [vmem:[%s1148_s1 + $0x30] sm:$0xff] }
  0x28   : > { %723 = vmatprep.subr.mxu0 %v927_v0  ;;  %742 = vmatprep.subr.mxu1 %v927_v0  ;;  %211 = vst.msk [vmem:[#allocation2] sm:$0x1] %vm210_vm0, %v927_v0  ;;  %212 = vst.msk [vmem:[#allocation3] sm:$0x1] %vm210_vm0, %v927_v0  ;;  %vm222_vm2 = vcmask 523264   ;;  %v287_v3 = vld [vmem:[%s1148_s1 + $0x28] sm:$0xff] }
  0x29   : > { %739 = vmatprep.mubr.msk.f32.mxu0 %vm928_vm1, %v927_v0  ;;  %758 = vmatprep.mubr.msk.f32.mxu1 %vm928_vm1, %v927_v0  ;;  %v213_v4 = vld [vmem:[%s1018_s25] sm:$0xff]  ;;  %v214_v5 = vld [vmem:[%s1018_s25 + $0x8] sm:$0xff]  ;;  %v215_v6 = vld [vmem:[%s1018_s25 + $0x10] sm:$0xff]  ;;  %vm448_vm3 = vcmask 261120   ;;  %p202_p7 = scmp.lt.s32.totalorder %s914_s15, 1  ;;  %vm598_vm4 = vcmask 1040384  }
  0x2a   : > { %724 = vmatpush3.msra.mxu0 %v289_v1  ;;  %743 = vmatpush3.msra.mxu1 %v289_v1  ;;  %v216_v7 = vld [vmem:[%s1018_s25 + $0x18] sm:$0xff]  ;;  %v223_v8 = vsel %vm222_vm2, %v213_v4, 0.0  ;;  %v248_v9 = vmul.f32 %v213_v4, %v213_v4  ;;  %v224_v11 = vsel %vm222_vm2, %v214_v5, 0.0  ;;  %v226_v12 = vsel %vm222_vm2, %v215_v6, 0.0  ;;  %v217_v14 = vld [vmem:[%s1018_s25 + $0x20] sm:$0xff]  ;;  %v218_v20 = vld [vmem:[%s1018_s25 + $0x28] sm:$0xff] }
  0x2b   : > { %725 = vmatprep.subr.mxu0 %v927_v0  ;;  %744 = vmatprep.subr.mxu1 %v927_v0  ;;  %v286_v10 = vld [vmem:[%s1148_s1 + $0x20] sm:$0xff]  ;;  %v249_v13 = vmul.f32 %v214_v5, %v214_v5  ;;  %v225_v15 = vadd.f32 %v224_v11, %v223_v8  ;;  %v285_v16 = vld [vmem:[%s1148_s1 + $0x18] sm:$0xff]  ;;  %v228_v17 = vsel %vm222_vm2, %v216_v7, 0.0  ;;  %v250_v18 = vmul.f32 %v215_v6, %v215_v6  ;;  %v284_v23 = vld [vmem:[%s1148_s1 + $0x10] sm:$0xff]  ;;  %s1162_s15 = smov (!%p202_p7, %s914_s15), 1 }
  0x2c   : > { %726 = vmatpush3.msra.mxu0 %v288_v2  ;;  %745 = vmatpush3.msra.mxu1 %v288_v2  ;;  %v251_v19 = vmul.f32 %v216_v7, %v216_v7  ;;  %v256_v22 = vsel %vm222_vm2, %v248_v9, 0.0  ;;  %v230_v24 = vsel %vm222_vm2, %v217_v14, 0.0  ;;  %v252_v25 = vmul.f32 %v217_v14, %v217_v14  ;;  %v219_v28 = vld [vmem:[%s1018_s25 + $0x30] sm:$0xff]  ;;  %v283_v31 = vld [vmem:[%s1148_s1 + $0x8] sm:$0xff]  ;;  %v220_v35 = vld [vmem:[%s1018_s25 + $0x38] sm:$0xff]  ;;  %s687_s29 = sshll.u32 %s1162_s15, 1 }
  0x2d   : > { %727 = vmatprep.subr.mxu0 %v927_v0  ;;  %746 = vmatprep.subr.mxu1 %v927_v0  ;;  %v227_v21 = vadd.f32 %v226_v12, %v225_v15  ;;  %v257_v26 = vsel %vm222_vm2, %v249_v13, 0.0  ;;  %v259_v27 = vsel %vm222_vm2, %v250_v18, 0.0  ;;  %v232_v32 = vsel %vm222_vm2, %v218_v20, 0.0  ;;  %v282_v38 = vld [vmem:[%s1148_s1] sm:$0xff]  ;;  %v293_v8 = vld [vmem:[%s1149_s2 + $0x18] sm:$0xff]  ;;  %v291_v12 = vld [vmem:[%s1149_s2 + $0x8] sm:$0xff]  ;;  %s205_s5 = scalar_lea.vmem %s1150_s3, %s687_s29 }
  0x2e   : > { %728 = vmatpush3.msra.mxu0 %v287_v3  ;;  %747 = vmatpush3.msra.mxu1 %v287_v3  ;;  %v258_v30 = vadd.f32 %v257_v26, %v256_v22  ;;  %v253_v33 = vmul.f32 %v218_v20, %v218_v20  ;;  %v261_v34 = vsel %vm222_vm2, %v251_v19, 0.0  ;;  %v234_v39 = vsel %vm222_vm2, %v219_v28, 0.0  ;;  %v290_v13 = vld [vmem:[%s1149_s2] sm:$0xff] }
  0x2f   : > { %729 = vmatprep.subr.mxu0 %v927_v0  ;;  %748 = vmatprep.subr.mxu1 %v927_v0  ;;  %v229_v29 = vadd.f32 %v228_v17, %v227_v21  ;;  %v254_v40 = vmul.f32 %v219_v28, %v219_v28  ;;  %v263_v41 = vsel %vm222_vm2, %v252_v25, 0.0  ;;  %v236_v44 = vsel %vm222_vm2, %v220_v35, 0.0  ;;  %v221_v63 = vld [vmem:[#allocation2] sm:$0x1]  ;;  %v247_v5 = vld [vmem:[#allocation3] sm:$0x1] }
  0x30   : > { %730 = vmatpush3.msra.mxu0 %v286_v10  ;;  %749 = vmatpush3.msra.mxu1 %v286_v10  ;;  %v260_v37 = vadd.f32 %v259_v27, %v258_v30  ;;  %v255_v45 = vmul.f32 %v220_v35, %v220_v35  ;;  %v265_v46 = vsel %vm222_vm2, %v253_v33, 0.0  ;;  %v292_v10 = vld [vmem:[%s1149_s2 + $0x10] sm:$0xff]  ;;  %vm600_vm5 = vcmask 517120  }
  0x31   : > { %731 = vmatprep.subr.mxu0 %v927_v0  ;;  %750 = vmatprep.subr.mxu1 %v927_v0  ;;  %v231_v36 = vadd.f32 %v230_v24, %v229_v29  ;;  %v267_v49 = vsel %vm222_vm2, %v254_v40, 0.0 }
  0x32   : > { %732 = vmatpush3.msra.mxu0 %v285_v16  ;;  %751 = vmatpush3.msra.mxu1 %v285_v16  ;;  %v262_v43 = vadd.f32 %v261_v34, %v260_v37  ;;  %v269_v52 = vsel %vm222_vm2, %v255_v45, 0.0 }
  0x33   : > { %733 = vmatprep.subr.mxu0 %v927_v0  ;;  %752 = vmatprep.subr.mxu1 %v927_v0  ;;  %v233_v42 = vadd.f32 %v232_v32, %v231_v36 }
  0x34   : > { %734 = vmatpush3.msra.mxu0 %v284_v23  ;;  %753 = vmatpush3.msra.mxu1 %v284_v23  ;;  %v264_v48 = vadd.f32 %v263_v41, %v262_v43 }
  0x35   : > { %735 = vmatprep.subr.mxu0 %v927_v0  ;;  %754 = vmatprep.subr.mxu1 %v927_v0  ;;  %v235_v47 = vadd.f32 %v234_v39, %v233_v42 }
  0x36   : > { %736 = vmatpush3.msra.mxu0 %v283_v31  ;;  %755 = vmatpush3.msra.mxu1 %v283_v31  ;;  %v266_v51 = vadd.f32 %v265_v46, %v264_v48 }
  0x37   : > { %737 = vmatprep.subr.mxu0 %v927_v0  ;;  %756 = vmatprep.subr.mxu1 %v927_v0  ;;  %v237_v50 = vadd.f32 %v236_v44, %v235_v47 }
  0x38   : > { %738 = vmatpush3.msra.mxu0 %v282_v38  ;;  %757 = vmatpush3.msra.mxu1 %v282_v38  ;;  %v268_v54 = vadd.f32 %v267_v49, %v266_v51 }
  0x39   : > { %761 = vmatprep.subr.mxu0 %v927_v0  ;;  %772 = vmatprep.subr.mxu1 %v927_v0  ;;  %v238_v53 = vrot.slane %v237_v50, 4 }
  0x3a   : > { %v270_v56 = vadd.f32 %v269_v52, %v268_v54 }
  0x3b   : > { %v239_v55 = vadd.f32 %v238_v53, %v237_v50 }
  0x3c   : > { %v271_v58 = vrot.slane %v270_v56, 4 }
  0x3d   : > { %v240_v57 = vrot.slane %v239_v55, 2 }
  0x3e   : > { %v272_v60 = vadd.f32 %v271_v58, %v270_v56 }
  0x3f   : > { %v241_v59 = vadd.f32 %v240_v57, %v239_v55 }
  0x40   : > { %v273_v62 = vrot.slane %v272_v60, 2 }
  0x41   : > { %v242_v61 = vrot.slane %v241_v59, 1 }
  0x42   : > { %v274_v2 = vadd.f32 %v273_v62, %v272_v60 }
  0x43   : > { %v243_v1 = vadd.f32 %v242_v61, %v241_v59 }
  0x44   : > { %v275_v4 = vrot.slane %v274_v2, 1 }
  0x45   : > { %v244_v3 = vadd.f32 %v243_v1, %v221_v63 }
  0x46   : > { %v276_v6 = vadd.f32 %v275_v4, %v274_v2 }
  0x47   : > { %246 = vst.msk [vmem:[#allocation2] sm:$0x1] %vm210_vm0, %v244_v3 }
  0x48   : > { %v277_v7 = vadd.f32 %v276_v6, %v247_v5 }
  0x4a   : > { %278 = vst.msk [vmem:[#allocation3] sm:$0x1] %vm210_vm0, %v277_v7 }
  0x4e   : > { %v294_v9 = vld [vmem:[#allocation2] sm:$0x1] }
  0x4f   : > { %740 = vmatmul.mubr.msk.f32.vlgmr.msra.gmra.mxu0 %vm222_vm2, %v294_v9 }
  0x50   : > { %762 = vmatpush3.msra.mxu0 %v293_v8  ;;  %769 = vmatprep.mubr.msk.f32.mxu0 %vm928_vm1, %v927_v0 }
  0x51   : > { %763 = vmatprep.subr.mxu0 %v927_v0  ;;  %v368_v11 = vld [vmem:[#allocation3] sm:$0x1] }
  0x52   : > { %764 = vmatpush3.msra.mxu0 %v292_v10  ;;  %759 = vmatmul.mubr.msk.f32.vlgmr.msra.gmra.mxu1 %vm222_vm2, %v368_v11 }
  0x53   : > { %765 = vmatprep.subr.mxu0 %v927_v0  ;;  %773 = vmatpush3.msra.mxu1 %v293_v8 }
  0x54   : > { %780 = vmatprep.mubr.msk.f32.mxu1 %vm928_vm1, %v927_v0  ;;  %774 = vmatprep.subr.mxu1 %v927_v0 }
  0x55   : > { %775 = vmatpush3.msra.mxu1 %v292_v10  ;;  %766 = vmatpush3.msra.mxu0 %v291_v12 }
  0x56   : > { %776 = vmatprep.subr.mxu1 %v927_v0  ;;  %767 = vmatprep.subr.mxu0 %v927_v0 }
  0x57   : > { %777 = vmatpush3.msra.mxu1 %v291_v12  ;;  %768 = vmatpush3.msra.mxu0 %v290_v13 }
  0x58   : > { %778 = vmatprep.subr.mxu1 %v927_v0 }
  0x59   : > { %779 = vmatpush3.msra.mxu1 %v290_v13 }
 0x10f   : > { %v364_v14 = vpop.f32.mrf.mxu0 }
 0x110   : > { %v442_v15 = vmul.f32 0.0078125, %v364_v14 }
 0x111   : > { %v741_v16 = vpop.f32.mrf.mxu0 }
 0x112   : > { %v444_v17 = vmul.f32 %v442_v15, %v442_v15  ;;  %770 = vmatmul.mubr.msk.f32.vlgmr.msra.gmra.mxu0 %vm448_vm3, %v442_v15  ;;  %v438_v18 = vpop.f32.mrf.mxu1 }
 0x113   : > { %v443_v19 = vmul.f32 0.0078125, %v438_v18 }
 0x114   : > { %v760_v20 = vpop.f32.mrf.mxu1 }
 0x115   : > { %v445_v21 = vsub.f32 %v443_v19, %v444_v17 }
 0x117   : > { %v446_v22 = vadd.f32 1e-06, %v445_v21 }
 0x119   : > { %842 = vrsqrt.f32 %v446_v22 }
 0x126   : > { %v843_v23 = vpop.eup %842 }
 0x127   : > { %781 = vmatmul.mubr.msk.f32.vlgmr.msra.gmra.mxu1 %vm448_vm3, %v843_v23 }
 0x1d2   : > { %v518_v24 = vpop.f32.mrf.mxu0 }
 0x1d4   : > { %v771_v0 = vpop.f32.mrf.mxu0 }
 0x1e7   : > { %v591_v25 = vpop.f32.mrf.mxu1 }
 0x1e8   : > { %v596_v26 = vrot.slane %v591_v25, 7 }
 0x1e9   : > { %v782_v27 = vpop.f32.mrf.mxu1 }
 0x1ea   : > { %v599_v28 = vsel %vm598_vm4, %v518_v24, %v596_v26 }
 0x1eb   : > { %601 = vst.msk [vmem:[%s205_s5] sm:$0x3] %vm600_vm5, %v599_v28 }
 0x1ec PF: > { %s16_s17 = sadd.s32 1, %s922_s17   ;;  %s1154_s12 = smov %s906_s13 }
 0x1ed   : > { %p13_p8 = scmp.ge.s32.totalorder %s16_s17, 4   ;;  %s1155_s13 = smov %s910_s14 }
 0x1ee   : > { %s1156_s14 = smov %s998_s24  ;;  %s1157_s15 = smov %s918_s16 }
 0x1ef   : > { %s1158_s16 = smov %s1160_s19  ;;  %15 = sbr.rel (!%p13_p8) target bundleno = 4 (0x4), region = 80 }
 0x1f4   :  { %621 = vsyncpa [#allocation5], 1 }
 0x1f5   :  { %623 = vsyncpa [#allocation5 + $0x1], 1 }

// kernel: _lambda_.5
= control target key start
LH: loop header
LB: loop body
LE: loop exit
PB: predicated region body
PF: predicated region fallthrough
CT: control target
= control target key end

     0   :  { %s1118_s27 = smov 0   ;;  %s1120_s28 = smov 0   ;;  %s1285_s0 = inlined_call_operand.vmem [shape: f32[2,64,64], index: 0, kind: input, shape index: {}]   ;;  %s1286_s1 = inlined_call_operand.vmem [shape: f32[2,2,64], index: 1, kind: input, shape index: {}]   ;;  %s1287_s2 = inlined_call_operand.vmem [shape: f32[1,64], index: 2, kind: input, shape index: {}]   ;;  %s1288_s3 = inlined_call_operand.vmem [shape: f32[1,64], index: 3, kind: input, shape index: {}]   ;;  %s1289_s4 = inlined_call_operand.vmem [shape: bf16[64,192], index: 4, kind: input, shape index: {}]   ;;  %s1290_s5 = inlined_call_operand.vmem [shape: f32[1,192], index: 5, kind: input, shape index: {}]   ;;  %s1291_s6 = inlined_call_operand.vmem [shape: bf16[2,64,64], index: 6, kind: output, shape index: {0}]   ;;  %s1292_s7 = inlined_call_operand.vmem [shape: bf16[2,64,64], index: 7, kind: output, shape index: {1}]   ;;  %s1293_s8 = inlined_call_operand.vmem [shape: bf16[2,64,64], index: 8, kind: output, shape index: {2}]  }
   0x1   :  { %s1122_s29 = smov 0  }
   0x2 LB: > { %s31_s30 = sadd.s32 1, %s1065_s28  ;;  %p939_p0 = scmp.ge.s32.totalorder %s1069_s29, 1  ;;  %s1069_s29 = sphi %s1122_s29, %s19_s29   ;;  %s1065_s28 = sphi %s1120_s28, %s1295_s28   ;;  %s1061_s27 = sphi %s1118_s27, %s1294_s27  }
   0x3   : > { %p33_p1 = scmp.ge.s32.totalorder %s31_s30, 2  ;;  %p301_p2 = scmp.lt.s32.totalorder %s1069_s29, 3 }
   0x5   : > { %s1297_s30 = smov (%p33_p1, %s31_s30), 0  ;;  %p302_p3 = pnand %p939_p0, %p301_p2 }
   0x6   : > { %p366_p4 = scmp.lt.s32.totalorder (!%p302_p3), %s1061_s27, 1  ;;  %s1072_s9 = smov (!%p302_p3), 64  }
   0x7   : > { %305 = sbr.rel (%p302_p3) target bundleno = 360 (0x168), region = 44 }
   0xc   : > { %v1035_v0 = vld [vmem:[%s1289_s4 + $0x34] ss:$8 sps:$4 sm:$0xff]   ;;  %v419_v1 = vlaneseq  ;;  %v1037_v2 = vld [vmem:[%s1289_s4 + $0x30] ss:$8 sps:$4 sm:$0xff]   ;;  %v1071_v3 = vmov 0   ;;  %s1299_s27 = smov (!%p366_p4, %s1061_s27), 1 }
   0xd   : > { %582 = vmatprep.mubr.bf16.mxu0 %v1071_v3  ;;  %602 = vmatprep.mubr.bf16.mxu1 %v1071_v3  ;;  %v1038_v4 = vld [vmem:[%s1289_s4 + $0x24] ss:$8 sps:$4 sm:$0xff]   ;;  %v1040_v5 = vld [vmem:[%s1289_s4 + $0x20] ss:$8 sps:$4 sm:$0xff]   ;;  %v1041_v7 = vld [vmem:[%s1289_s4 + $0x14] ss:$8 sps:$4 sm:$0xff]  }
   0xe   : > { %558 = vmatprep.subr.bf16.mxu0 %v1035_v0  ;;  %1001 = vmatprep.subr.bf16.mxu1 %v1035_v0  ;;  %v1152_v6 = vshrl.u32 %v419_v1, 7  ;;  %s981_s19 = sshll.u32 %s1299_s27, 6  ;;  %s942_s20 = sshll.u32 %s1299_s27, 1  ;;  %v1043_v8 = vld [vmem:[%s1289_s4 + $0x10] ss:$8 sps:$4 sm:$0xff]   ;;  %vm537_vm0 = vcmask 523264  }
   0xf   : > { %559 = vmatpush1.bf16.msra.mxu0 %v1037_v2  ;;  %1005 = vmatpush1.bf16.msra.mxu1 %v1037_v2  ;;  %s373_s25 = scalar_lea.vmem %s1285_s0, %s981_s19  ;;  %s378_s10 = scalar_lea.vmem %s1286_s1, %s942_s20  ;;  %v1044_v14 = vld [vmem:[%s1289_s4 + $0x4] ss:$8 sps:$4 sm:$0xff]   ;;  %v949_v27 = vld [vmem:[%s1287_s2] ss:$0 sm:$0xff]  ;;  %vm655_vm1 = vcmask 519168  }
  0x10   : > { %560 = vmatprep.subr.bf16.mxu0 %v1038_v4  ;;  %1002 = vmatprep.subr.bf16.mxu1 %v1038_v4  ;;  %v421_v9 = vsub.s32 0, %v1152_v6  ;;  %v433_v10 = vsub.s32 1, %v1152_v6  ;;  %v410_v11 = vld [vmem:[%s373_s25] sm:$0xff]  ;;  %v411_v12 = vld [vmem:[%s373_s25 + $0x8] sm:$0xff]  ;;  %v412_v19 = vld [vmem:[%s373_s25 + $0x10] sm:$0xff]  ;;  %s1198_s21 = sshll.u32 %s1299_s27, 5 }
  0x11   : > { %v418_v13 = vld [vmem:[%s378_s10] sm:$0x3]  ;;  %v415_v18 = vld [vmem:[%s373_s25 + $0x28] sm:$0xff]  ;;  %v413_v20 = vld [vmem:[%s373_s25 + $0x18] sm:$0xff]  ;;  %s1208_s24 = scalar_lea.vmem %s1291_s6, %s1198_s21  ;;  %s1215_s26 = scalar_lea.vmem %s1293_s8, %s1198_s21 }
  0x12   : > { %v422_v15 = vrot.slane %v418_v13, %v421_v9  ;;  %v434_v16 = vrot.slane %v418_v13, %v433_v10  ;;  %v414_v17 = vld [vmem:[%s373_s25 + $0x20] sm:$0xff]  ;;  %v416_v21 = vld [vmem:[%s373_s25 + $0x30] sm:$0xff]  ;;  %v417_v26 = vld [vmem:[%s373_s25 + $0x38] sm:$0xff]  ;;  %s397_s12 = scalar_lea.vmem %s1292_s7, %s1198_s21 }
  0x13   : > { %561 = vmatpush1.bf16.msra.mxu0 %v1040_v5  ;;  %1006 = vmatpush1.bf16.msra.mxu1 %v1040_v5  ;;  %v1046_v32 = vld [vmem:[%s1289_s4] ss:$8 sps:$4 sm:$0xff]  }
  0x14   : > { %562 = vmatprep.subr.bf16.mxu0 %v1041_v7  ;;  %1003 = vmatprep.subr.bf16.mxu1 %v1041_v7  ;;  %v423_v22 = vsub.f32 %v410_v11, %v422_v15  ;;  %v424_v23 = vsub.f32 %v411_v12, %v422_v15  ;;  %v427_v24 = vsub.f32 %v414_v17, %v422_v15  ;;  %v950_v36 = vld [vmem:[%s1288_s3] ss:$0 sm:$0xff] }
  0x15   : > { %v428_v25 = vsub.f32 %v415_v18, %v422_v15  ;;  %v425_v28 = vsub.f32 %v412_v19, %v422_v15  ;;  %v426_v29 = vsub.f32 %v413_v20, %v422_v15  ;;  %v429_v30 = vsub.f32 %v416_v21, %v422_v15  ;;  %v485_v62 = vld [vmem:[%s1290_s5] sm:$0x3] }
  0x16   : > { %v430_v31 = vsub.f32 %v417_v26, %v422_v15  ;;  %v435_v33 = vmul.f32 %v434_v16, %v423_v22  ;;  %v436_v34 = vmul.f32 %v434_v16, %v424_v23  ;;  %v439_v35 = vmul.f32 %v434_v16, %v427_v24 }
  0x17   : > { %563 = vmatpush1.bf16.msra.mxu0 %v1043_v8  ;;  %1007 = vmatpush1.bf16.msra.mxu1 %v1043_v8  ;;  %v440_v37 = vmul.f32 %v434_v16, %v428_v25  ;;  %v437_v38 = vmul.f32 %v434_v16, %v425_v28  ;;  %v438_v39 = vmul.f32 %v434_v16, %v426_v29 }
  0x18   : > { %564 = vmatprep.subr.bf16.mxu0 %v1044_v14  ;;  %1004 = vmatprep.subr.bf16.mxu1 %v1044_v14  ;;  %v450_v40 = vmul.f32 %v949_v27, %v435_v33  ;;  %v451_v41 = vmul.f32 %v949_v27, %v436_v34  ;;  %v454_v42 = vmul.f32 %v949_v27, %v439_v35 }
  0x19   : > { %v441_v43 = vmul.f32 %v434_v16, %v429_v30  ;;  %v455_v44 = vmul.f32 %v949_v27, %v440_v37  ;;  %v452_v45 = vmul.f32 %v949_v27, %v437_v38  ;;  %v453_v46 = vmul.f32 %v949_v27, %v438_v39 }
  0x1a   : > { %v442_v47 = vmul.f32 %v434_v16, %v430_v31  ;;  %v465_v48 = vadd.f32 %v950_v36, %v450_v40  ;;  %v466_v49 = vadd.f32 %v950_v36, %v451_v41  ;;  %v469_v50 = vadd.f32 %v950_v36, %v454_v42 }
  0x1b   : > { %565 = vmatpush1.bf16.msra.mxu0 %v1046_v32  ;;  %1008 = vmatpush1.bf16.msra.mxu1 %v1046_v32  ;;  %v470_v51 = vadd.f32 %v950_v36, %v455_v44  ;;  %v456_v52 = vmul.f32 %v949_v27, %v441_v43  ;;  %v467_v56 = vadd.f32 %v950_v36, %v452_v45 }
  0x1c   : > { %v473_v53 = vpack.c.bf16 %v466_v49, %v465_v48  ;;  %v457_v54 = vmul.f32 %v949_v27, %v442_v47  ;;  %v468_v57 = vadd.f32 %v950_v36, %v453_v46  ;;  %v490_v63 = vrot.slane %v485_v62, %v421_v9 }
  0x1d   : > { %v475_v55 = vpack.c.bf16 %v470_v51, %v469_v50  ;;  %v471_v58 = vadd.f32 %v950_v36, %v456_v52  ;;  %v1202_v0 = vrot.slane %v485_v62, %v433_v10 }
  0x1e   : > { %959 = vmatmul.mubr.msk.bf16.vlgmr.msra.gmra.mxu0 %vm537_vm0, %v473_v53  ;;  %v472_v59 = vadd.f32 %v950_v36, %v457_v54  ;;  %v474_v60 = vpack.c.bf16 %v468_v57, %v467_v56 }
  0x1f   : > { %961 = vmatmul.mubr.msk.bf16.vlgmr.msra.gmra.mxu1 %vm537_vm0, %v475_v55  ;;  %592 = vmatprep.mubr.bf16.mxu0 %v1071_v3 }
  0x20   : > { %612 = vmatprep.mubr.bf16.mxu1 %v1071_v3  ;;  %v476_v61 = vpack.c.bf16 %v472_v59, %v471_v58 }
  0x26   : > { %960 = vmatmul.mubr.msk.bf16.gmra.mxu0 %vm537_vm0, %v474_v60 }
  0x27   : > { %962 = vmatmul.mubr.msk.bf16.gmra.mxu1 %vm537_vm0, %v476_v61 }
  0xde   : > { %v584_v1 = vpop.f32.mrf.mxu0 }
  0xdf   : > { %v585_v2 = vadd.f32 %v584_v1, %v490_v63  ;;  %v604_v3 = vpop.f32.mrf.mxu1 }
  0xe0   : > { %v605_v4 = vadd.f32 %v604_v3, %v490_v63  ;;  %v586_v5 = vpop.f32.mrf.mxu0 }
  0xe1   : > { %v985_v7 = vpack.c.bf16 %v585_v2, %v585_v2  ;;  %v587_v6 = vadd.f32 %v586_v5, %v1202_v0  ;;  %v606_v8 = vpop.f32.mrf.mxu1 }
  0xe2   : > { %v989_v9 = vpack.c.bf16 %v605_v4, %v605_v4  ;;  %v607_v10 = vadd.f32 %v606_v8, %v1202_v0  ;;  %v588_v11 = vpop.f32.mrf.mxu0 }
  0xe3   : > { %656 = vst.msk [vmem:[%s1208_s24] sm:$0xf] %vm655_vm1, %v985_v7  ;;  %v993_v12 = vpack.c.bf16 %v587_v6, %v587_v6  ;;  %v589_v13 = vadd.f32 %v588_v11, %v490_v63  ;;  %v608_v14 = vpop.f32.mrf.mxu1  ;;  %664 = vrot.lane.b32.xlu0 %v985_v7, %s1072_s9 }
  0xe4   : > { %660 = vst.msk [vmem:[%s1208_s24 + $0x10] sm:$0xf] %vm655_vm1, %v989_v9  ;;  %v997_v15 = vpack.c.bf16 %v607_v10, %v607_v10  ;;  %v609_v16 = vadd.f32 %v608_v14, %v490_v63  ;;  %v590_v17 = vpop.f32.mrf.mxu0 }
  0xe5   : > { %728 = vst.msk [vmem:[%s1215_s26] sm:$0xf] %vm655_vm1, %v993_v12  ;;  %v986_v18 = vpack.c.bf16 %v589_v13, %v589_v13  ;;  %v591_v19 = vadd.f32 %v590_v17, %v1202_v0  ;;  %v610_v20 = vpop.f32.mrf.mxu1 }
  0xe6   : > { %732 = vst.msk [vmem:[%s1215_s26 + $0x10] sm:$0xf] %vm655_vm1, %v997_v15  ;;  %v990_v21 = vpack.c.bf16 %v609_v16, %v609_v16  ;;  %v611_v22 = vadd.f32 %v610_v20, %v1202_v0  ;;  %v594_v23 = vpop.f32.mrf.mxu0 }
  0xe7   : > { %657 = vst.msk [vmem:[%s1208_s24 + $0x4] sm:$0xf] %vm655_vm1, %v986_v18  ;;  %v994_v24 = vpack.c.bf16 %v591_v19, %v591_v19  ;;  %v595_v25 = vadd.f32 %v594_v23, %v490_v63  ;;  %v614_v26 = vpop.f32.mrf.mxu1  ;;  %672 = vrot.lane.b32.xlu0 %v989_v9, %s1072_s9 }
  0xe8   : > { %661 = vst.msk [vmem:[%s1208_s24 + $0x14] sm:$0xf] %vm655_vm1, %v990_v21  ;;  %v998_v27 = vpack.c.bf16 %v611_v22, %v611_v22  ;;  %v615_v28 = vadd.f32 %v614_v26, %v490_v63  ;;  %674 = vrot.lane.b32.xlu1 %v990_v21, %s1072_s9  ;;  %v596_v29 = vpop.f32.mrf.mxu0 }
  0xe9   : > { %729 = vst.msk [vmem:[%s1215_s26 + $0x4] sm:$0xf] %vm655_vm1, %v994_v24  ;;  %v987_v30 = vpack.c.bf16 %v595_v25, %v595_v25  ;;  %v597_v31 = vadd.f32 %v596_v29, %v1202_v0  ;;  %v616_v32 = vpop.f32.mrf.mxu1 }
  0xea   : > { %733 = vst.msk [vmem:[%s1215_s26 + $0x14] sm:$0xf] %vm655_vm1, %v998_v27  ;;  %v991_v33 = vpack.c.bf16 %v615_v28, %v615_v28  ;;  %v617_v34 = vadd.f32 %v616_v32, %v1202_v0  ;;  %v598_v35 = vpop.f32.mrf.mxu0 }
  0xeb   : > { %658 = vst.msk [vmem:[%s1208_s24 + $0x8] sm:$0xf] %vm655_vm1, %v987_v30  ;;  %v995_v36 = vpack.c.bf16 %v597_v31, %v597_v31  ;;  %v599_v37 = vadd.f32 %v598_v35, %v490_v63  ;;  %v618_v38 = vpop.f32.mrf.mxu1  ;;  %666 = vrot.lane.b32.xlu0 %v986_v18, %s1072_s9 }
  0xec   : > { %662 = vst.msk [vmem:[%s1208_s24 + $0x18] sm:$0xf] %vm655_vm1, %v991_v33  ;;  %v999_v39 = vpack.c.bf16 %v617_v34, %v617_v34  ;;  %v619_v40 = vadd.f32 %v618_v38, %v490_v63  ;;  %668 = vrot.lane.b32.xlu1 %v987_v30, %s1072_s9  ;;  %v600_v41 = vpop.f32.mrf.mxu0 }
  0xed   : > { %730 = vst.msk [vmem:[%s1215_s26 + $0x8] sm:$0xf] %vm655_vm1, %v995_v36  ;;  %v988_v42 = vpack.c.bf16 %v599_v37, %v599_v37  ;;  %v601_v43 = vadd.f32 %v600_v41, %v1202_v0  ;;  %v620_v44 = vpop.f32.mrf.mxu1 }
  0xee   : > { %734 = vst.msk [vmem:[%s1215_s26 + $0x18] sm:$0xf] %vm655_vm1, %v999_v39  ;;  %v992_v45 = vpack.c.bf16 %v619_v40, %v619_v40  ;;  %v621_v46 = vadd.f32 %v620_v44, %v1202_v0 }
  0xef   : > { %659 = vst.msk [vmem:[%s1208_s24 + $0xc] sm:$0xf] %vm655_vm1, %v988_v42  ;;  %v996_v47 = vpack.c.bf16 %v601_v43, %v601_v43  ;;  %676 = vrot.lane.b32.xlu0 %v991_v33, %s1072_s9 }
  0xf0   : > { %663 = vst.msk [vmem:[%s1208_s24 + $0x1c] sm:$0xf] %vm655_vm1, %v992_v45  ;;  %v1000_v48 = vpack.c.bf16 %v621_v46, %v621_v46  ;;  %670 = vrot.lane.b32.xlu1 %v988_v42, %s1072_s9 }
  0xf1   : > { %731 = vst.msk [vmem:[%s1215_s26 + $0xc] sm:$0xf] %vm655_vm1, %v996_v47 }
  0xf2   : > { %735 = vst.msk [vmem:[%s1215_s26 + $0x1c] sm:$0xf] %vm655_vm1, %v1000_v48 }
  0xf4   : > { %678 = vrot.lane.b32.xlu1 %v992_v45, %s1072_s9 }
 0x155   : > { %v665_v49 = vpop.permute.xlu0 %664 }
 0x156   : > { %688 = vst.msk [vmem:[%s397_s12] sm:$0xf] %vm655_vm1, %v665_v49 }
 0x159   : > { %v673_v50 = vpop.permute.xlu0 %672 }
 0x15a   : > { %v675_v51 = vpop.permute.xlu1 %674  ;;  %692 = vst.msk [vmem:[%s397_s12 + $0x10] sm:$0xf] %vm655_vm1, %v673_v50 }
 0x15b   : > { %693 = vst.msk [vmem:[%s397_s12 + $0x14] sm:$0xf] %vm655_vm1, %v675_v51 }
 0x15d   : > { %v667_v52 = vpop.permute.xlu0 %666 }
 0x15e   : > { %v669_v53 = vpop.permute.xlu1 %668  ;;  %689 = vst.msk [vmem:[%s397_s12 + $0x4] sm:$0xf] %vm655_vm1, %v667_v52 }
 0x15f   : > { %690 = vst.msk [vmem:[%s397_s12 + $0x8] sm:$0xf] %vm655_vm1, %v669_v53 }
 0x161   : > { %v677_v54 = vpop.permute.xlu0 %676 }
 0x162   : > { %v671_v55 = vpop.permute.xlu1 %670  ;;  %694 = vst.msk [vmem:[%s397_s12 + $0x18] sm:$0xf] %vm655_vm1, %v677_v54 }
 0x163   : > { %691 = vst.msk [vmem:[%s397_s12 + $0xc] sm:$0xf] %vm655_vm1, %v671_v55 }
 0x166   : > { %v679_v56 = vpop.permute.xlu1 %678 }
 0x167   : > { %695 = vst.msk [vmem:[%s397_s12 + $0x1c] sm:$0xf] %vm655_vm1, %v679_v56 }
 0x168 PF: > { %s19_s29 = sadd.s32 1, %s1069_s29   ;;  %s1294_s27 = smov %s1065_s28 }
 0x169   : > { %p16_p5 = scmp.ge.s32.totalorder %s19_s29, 4   ;;  %s1295_s28 = smov %s1297_s30 }
 0x16b   :  { %18 = sbr.rel (!%p16_p5) target bundleno = 2 (0x2), region = 101 }

// kernel: _lambda_.6
= control target key start
LH: loop header
LB: loop body
LE: loop exit
PB: predicated region body
PF: predicated region fallthrough
CT: control target
= control target key end

     0   :  { %s1329_s12 = smov 0   ;;  %s1331_s13 = smov 0   ;;  %s1600_s0 = inlined_call_operand.vmem [shape: bf16[2,64,64], index: 0, kind: input, shape index: {}]   ;;  %s1601_s1 = inlined_call_operand.vmem [shape: bf16[2,64,64], index: 1, kind: input, shape index: {}]   ;;  %s1602_s2 = inlined_call_operand.vmem [shape: bf16[2,64,64], index: 2, kind: input, shape index: {}]   ;;  %s1603_s3 = inlined_call_operand.vmem [shape: bf16[2,64,64], index: 3, kind: output, shape index: {}]  }
   0x1   :  { %s1333_s14 = smov 0  }
   0x2 LB: > { %s32_s15 = sadd.s32 1, %s1300_s13  ;;  %p1090_p0 = scmp.ge.s32.totalorder %s1304_s14, 1  ;;  %s1304_s14 = sphi %s1333_s14, %s13_s14   ;;  %s1300_s13 = sphi %s1331_s13, %s1605_s13   ;;  %s1296_s12 = sphi %s1329_s12, %s1604_s12  }
   0x3   : > { %p34_p1 = scmp.ge.s32.totalorder %s32_s15, 2  ;;  %p199_p2 = scmp.lt.s32.totalorder %s1304_s14, 3 }
   0x5   : > { %s1607_s15 = smov (%p34_p1, %s32_s15), 0  ;;  %p200_p3 = pnand %p1090_p0, %p199_p2 }
   0x6   : > { %p250_p4 = scmp.lt.s32.totalorder (!%p200_p3), %s1296_s12, 1 }
   0x7   : > { %203 = sbr.rel (%p200_p3) target bundleno = 843 (0x34b), region = 32 }
   0xc   : > { %s1609_s12 = smov (!%p250_p4, %s1296_s12), 1  ;;  %vm311_vm0 = vcmask 523264   ;;  %vm294_vm1 = vcmask 7168   ;;  %v1306_v12 = vmov -inf   ;;  %v1307_v25 = vmov 0  }
   0xd   : > { %s1347_s16 = sshll.u32 %s1609_s12, 5  ;;  %297 = vst.msk [vmem:[#allocation2 + $0x10] sm:$0xff] %vm294_vm1, %v1306_v12  ;;  %295 = vst.msk [vmem:[#allocation2] sm:$0xff] %vm294_vm1, %v1306_v12  ;;  %1221 = vset.pattern.permute.xlu1 %v1307_v25  ;;  %1220 = vset.pattern.permute.xlu0 %v1307_v25  ;;  %v1308_v30 = vmov 0.0   ;;  %vm951_vm2 = vcmask 519168  }
   0xe   : > { %s267_s19 = scalar_lea.vmem %s1601_s1, %s1347_s16  ;;  %s257_s22 = scalar_lea.vmem %s1600_s0, %s1347_s16  ;;  %296 = vst.msk [vmem:[#allocation2 + $0x8] sm:$0xff] %vm294_vm1, %v1306_v12  ;;  %298 = vst.msk [vmem:[#allocation2 + $0x18] sm:$0xff] %vm294_vm1, %v1306_v12 }
   0xf   : > { %v1222_v0 = vld [vmem:[%s267_s19 + $0x18] sm:$0xff]   ;;  %v1223_v1 = vld [vmem:[%s267_s19 + $0x10] sm:$0xff]   ;;  %v1226_v3 = vld [vmem:[%s257_s22] sm:$0xff]   ;;  %299 = vst.msk [vmem:[#allocation2 + $0x20] sm:$0xff] %vm294_vm1, %v1306_v12  ;;  %s277_s25 = scalar_lea.vmem %s1602_s2, %s1347_s16  ;;  %s1573_s28 = scalar_lea.vmem %s1603_s3, %s1347_s16 }
  0x10   : > { %1189 = vmatprep.subr.msk.bf16.mxu0 %vm311_vm0, %v1222_v0  ;;  %v407_v2 = vsel %vm311_vm0, %v1222_v0, 0  ;;  %1165 = vmatprep.mubr.msk.bf16.mxu0 %vm311_vm0, %v1226_v3  ;;  %v404_v4 = vsel %vm311_vm0, %v1223_v1, 0  ;;  %v1224_v5 = vld [vmem:[%s267_s19 + $0x8] sm:$0xff]   ;;  %v1225_v7 = vld [vmem:[%s267_s19] sm:$0xff]   ;;  %v1228_v10 = vld [vmem:[%s257_s22 + $0x10] sm:$0xff]   ;;  %300 = vst.msk [vmem:[#allocation2 + $0x28] sm:$0xff] %vm294_vm1, %v1306_v12 }
  0x11   : > { %1158 = vmatpush3.bf16.xpose.msra.mxu0 %v407_v2  ;;  %v401_v6 = vsel %vm311_vm0, %v1224_v5, 0  ;;  %v398_v8 = vsel %vm311_vm0, %v1225_v7, 0  ;;  %v1227_v9 = vld [vmem:[%s257_s22 + $0x8] sm:$0xff]   ;;  %v1229_v11 = vld [vmem:[%s257_s22 + $0x18] sm:$0xff]   ;;  %301 = vst.msk [vmem:[#allocation2 + $0x30] sm:$0xff] %vm294_vm1, %v1306_v12  ;;  %302 = vst.msk [vmem:[#allocation2 + $0x38] sm:$0xff] %vm294_vm1, %v1306_v12 }
  0x12   : > { %1190 = vmatprep.subr.msk.bf16.mxu0 %vm311_vm0, %v1223_v1  ;;  %305 = vst.msk [vmem:[#allocation3 + $0x10] sm:$0xff] %vm294_vm1, %v1308_v30  ;;  %303 = vst.msk [vmem:[#allocation3] sm:$0xff] %vm294_vm1, %v1308_v30  ;;  %v1230_v52 = vld [vmem:[%s277_s25 + $0x18] sm:$0xff]   ;;  %v1231_v58 = vld [vmem:[%s277_s25 + $0x10] sm:$0xff]  }
  0x13   : > { %304 = vst.msk [vmem:[#allocation3 + $0x8] sm:$0xff] %vm294_vm1, %v1308_v30  ;;  %306 = vst.msk [vmem:[#allocation3 + $0x18] sm:$0xff] %vm294_vm1, %v1308_v30  ;;  %1173 = vmatprep.subr.bf16.mxu1 %v1230_v52  ;;  %v1232_v0 = vld [vmem:[%s277_s25 + $0x8] sm:$0xff]   ;;  %v1233_v2 = vld [vmem:[%s277_s25] sm:$0xff]  }
  0x14   : > { %307 = vst.msk [vmem:[#allocation3 + $0x20] sm:$0xff] %vm294_vm1, %v1308_v30  ;;  %308 = vst.msk [vmem:[#allocation3 + $0x28] sm:$0xff] %vm294_vm1, %v1308_v30  ;;  %v1425_v31 = vld [vmem:[#allocation2 + $0x10] sm:$0xff]  ;;  %v1427_v33 = vld [vmem:[#allocation2] sm:$0xff]  ;;  %1174 = vmatpush3.bf16.msra.mxu1 %v1230_v52 }
  0x15   : > { %309 = vst.msk [vmem:[#allocation3 + $0x30] sm:$0xff] %vm294_vm1, %v1308_v30  ;;  %310 = vst.msk [vmem:[#allocation3 + $0x38] sm:$0xff] %vm294_vm1, %v1308_v30  ;;  %v1432_v36 = vld [vmem:[#allocation2 + $0x18] sm:$0xff]  ;;  %v1442_v40 = vld [vmem:[#allocation2 + $0x8] sm:$0xff]  ;;  %1175 = vmatprep.subr.bf16.mxu1 %v1231_v58 }
  0x16   : > { %312 = vst.msk [vmem:[#allocation4] sm:$0xff] %vm311_vm0, %v1308_v30  ;;  %313 = vst.msk [vmem:[#allocation4 + $0x8] sm:$0xff] %vm311_vm0, %v1308_v30  ;;  %v1460_v46 = vld [vmem:[#allocation2 + $0x20] sm:$0xff] }
  0x17   : > { %314 = vst.msk [vmem:[#allocation4 + $0x10] sm:$0xff] %vm311_vm0, %v1308_v30  ;;  %315 = vst.msk [vmem:[#allocation4 + $0x18] sm:$0xff] %vm311_vm0, %v1308_v30  ;;  %v1476_v51 = vld [vmem:[#allocation2 + $0x28] sm:$0xff] }
  0x18   : > { %316 = vst.msk [vmem:[#allocation4 + $0x20] sm:$0xff] %vm311_vm0, %v1308_v30  ;;  %317 = vst.msk [vmem:[#allocation4 + $0x28] sm:$0xff] %vm311_vm0, %v1308_v30  ;;  %v1466_v49 = vld [vmem:[#allocation2 + $0x30] sm:$0xff]  ;;  %v1488_v59 = vld [vmem:[#allocation2 + $0x38] sm:$0xff]  ;;  %1176 = vmatpush3.bf16.msra.mxu1 %v1231_v58 }
  0x19   : > { %1160 = vmatpush3.bf16.xpose.msra.mxu0 %v404_v4  ;;  %318 = vst.msk [vmem:[#allocation4 + $0x30] sm:$0xff] %vm311_vm0, %v1308_v30  ;;  %319 = vst.msk [vmem:[#allocation4 + $0x38] sm:$0xff] %vm311_vm0, %v1308_v30  ;;  %1177 = vmatprep.subr.bf16.mxu1 %v1232_v0 }
  0x1a   : > { %1191 = vmatprep.subr.msk.bf16.mxu0 %vm311_vm0, %v1224_v5 }
  0x1c   : > { %1178 = vmatpush3.bf16.msra.mxu1 %v1232_v0 }
  0x1d   : > { %1179 = vmatprep.subr.bf16.mxu1 %v1233_v2 }
  0x20   : > { %1180 = vmatpush3.bf16.msra.mxu1 %v1233_v2 }
  0x21   : > { %1162 = vmatpush3.bf16.xpose.msra.mxu0 %v401_v6 }
  0x22   : > { %1192 = vmatprep.subr.msk.bf16.mxu0 %vm311_vm0, %v1225_v7 }
  0x29   : > { %1164 = vmatpush3.bf16.xpose.msra.mxu0 %v398_v8 }
  0x30   : > { %1166 = vmatmul.mubr.msk.bf16.vlgmr.msra.gmra.mxu0 %vm311_vm0, %v1227_v9 }
  0x31   : > { %1169 = vmatprep.mubr.msk.bf16.mxu0 %vm311_vm0, %v1228_v10 }
  0x38   : > { %1170 = vmatmul.mubr.msk.bf16.gmra.mxu0 %vm311_vm0, %v1229_v11 }
  0xf0   : > { %v1377_v13 = vpop.f32.mrf.mxu0 }
  0xf1   : > { %v488_v14 = vsel %vm311_vm0, %v1377_v13, -inf }
  0xf2   : > { %489 = vmax.xlane.f32.xlu1 %v488_v14  ;;  %v1381_v15 = vpop.f32.mrf.mxu0 }
  0xf3   : > { %v482_v16 = vsel %vm311_vm0, %v1381_v15, -inf }
  0xf4   : > { %483 = vmax.xlane.f32.xlu0 %v482_v16  ;;  %v1385_v17 = vpop.f32.mrf.mxu0 }
  0xf5   : > { %v491_v18 = vsel %vm311_vm0, %v1385_v17, -inf }
  0xf6   : > { %492 = vmax.xlane.f32.xlu1 %v491_v18  ;;  %v1389_v19 = vpop.f32.mrf.mxu0 }
  0xf7   : > { %v485_v20 = vsel %vm311_vm0, %v1389_v19, -inf }
  0xf8   : > { %486 = vmax.xlane.f32.xlu0 %v485_v20  ;;  %v1393_v21 = vpop.f32.mrf.mxu0 }
  0xf9   : > { %v500_v27 = vsel %vm311_vm0, %v1393_v21, -inf }
  0xfa   : > { %v1395_v22 = vpop.f32.mrf.mxu0 }
  0xfb   : > { %v494_v23 = vsel %vm311_vm0, %v1395_v22, -inf }
  0xfc   : > { %495 = vmax.xlane.f32.xlu0 %v494_v23  ;;  %v1399_v24 = vpop.f32.mrf.mxu0 }
  0xfd   : > { %v503_v29 = vsel %vm311_vm0, %v1399_v24, -inf }
  0xfe   : > { %v1401_v26 = vpop.f32.mrf.mxu0 }
  0xff   : > { %v497_v28 = vsel %vm311_vm0, %v1401_v26, -inf }
 0x100   : > { %501 = vmax.xlane.f32.xlu0 %v500_v27  ;;  %498 = vmax.xlane.f32.xlu1 %v497_v28 }
 0x104   : > { %504 = vmax.xlane.f32.xlu1 %v503_v29 }
 0x17b   : > { %v490_v32 = vpop.xlane.xlu1 %489 }
 0x17c   : > { %v1430_v34 = vmax.f32 %v1425_v31, %v490_v32 }
 0x17d   : > { %v484_v35 = vpop.xlane.xlu0 %483 }
 0x17e   : > { %v516_v37 = vsub.f32 %v1425_v31, %v1430_v34  ;;  %838 = vst.msk [vmem:[#allocation2 + $0x10] sm:$0xff] %vm294_vm1, %v1430_v34  ;;  %v1439_v38 = vmax.f32 %v1427_v33, %v484_v35  ;;  %550 = vperm.xlu1 %1221, %v1430_v34  }
 0x17f   : > { %v493_v39 = vpop.xlane.xlu1 %492 }
 0x180   : > { %v514_v41 = vsub.f32 %v1427_v33, %v1439_v38  ;;  %836 = vst.msk [vmem:[#allocation2] sm:$0xff] %vm294_vm1, %v1439_v38  ;;  %v1449_v42 = vmax.f32 %v1432_v36, %v493_v39  ;;  %540 = vperm.xlu0 %1220, %v1439_v38  }
 0x181   : > { %v487_v43 = vpop.xlane.xlu0 %486 }
 0x182   : > { %v517_v44 = vsub.f32 %v1432_v36, %v1449_v42  ;;  %839 = vst.msk [vmem:[#allocation2 + $0x18] sm:$0xff] %vm294_vm1, %v1449_v42  ;;  %v1457_v45 = vmax.f32 %v1442_v40, %v487_v43  ;;  %555 = vperm.xlu1 %1221, %v1449_v42  }
 0x184   : > { %v515_v47 = vsub.f32 %v1442_v40, %v1457_v45  ;;  %837 = vst.msk [vmem:[#allocation2 + $0x8] sm:$0xff] %vm294_vm1, %v1457_v45  ;;  %v528_v40 = vmul.f32 1.442695, %v517_v44 }
 0x185   : > { %v496_v48 = vpop.xlane.xlu0 %495 }
 0x186   : > { %v1473_v50 = vmax.f32 %v1460_v46, %v496_v48  ;;  %545 = vperm.xlu1 %1221, %v1457_v45  }
 0x188   : > { %v518_v53 = vsub.f32 %v1460_v46, %v1473_v50  ;;  %840 = vst.msk [vmem:[#allocation2 + $0x20] sm:$0xff] %vm294_vm1, %v1473_v50 }
 0x189   : > { %v502_v54 = vpop.xlane.xlu0 %501  ;;  %v499_v55 = vpop.xlane.xlu1 %498 }
 0x18a   : > { %v1483_v56 = vmax.f32 %v1466_v49, %v502_v54  ;;  %v1486_v57 = vmax.f32 %v1476_v51, %v499_v55  ;;  %v530_v45 = vmul.f32 1.442695, %v518_v53 }
 0x18c   : > { %v520_v60 = vsub.f32 %v1466_v49, %v1483_v56  ;;  %842 = vst.msk [vmem:[#allocation2 + $0x30] sm:$0xff] %vm294_vm1, %v1483_v56  ;;  %v519_v61 = vsub.f32 %v1476_v51, %v1486_v57  ;;  %841 = vst.msk [vmem:[#allocation2 + $0x28] sm:$0xff] %vm294_vm1, %v1486_v57  ;;  %570 = vperm.xlu1 %1221, %v1483_v56   ;;  %v604_v49 = vld [vmem:[#allocation3 + $0x10] sm:$0xff] }
 0x18d   : > { %v505_v62 = vpop.xlane.xlu1 %504 }
 0x18e   : > { %v1500_v63 = vmax.f32 %v1488_v59, %v505_v62  ;;  %v532_v33 = vmul.f32 1.442695, %v519_v61  ;;  %v534_v31 = vmul.f32 1.442695, %v520_v60  ;;  %v605_v60 = vld [vmem:[#allocation3 + $0x18] sm:$0xff] }
 0x190   : > { %v521_v1 = vsub.f32 %v1488_v59, %v1500_v63  ;;  %843 = vst.msk [vmem:[#allocation2 + $0x38] sm:$0xff] %vm294_vm1, %v1500_v63  ;;  %560 = vperm.xlu1 %1221, %v1473_v50   ;;  %v602_v50 = vld [vmem:[#allocation3] sm:$0xff] }
 0x192   : > { %v536_v34 = vmul.f32 1.442695, %v521_v1 }
 0x194   : > { %565 = vperm.xlu1 %1221, %v1486_v57  }
 0x198   : > { %575 = vperm.xlu1 %1221, %v1500_v63   ;;  %v603_v63 = vld [vmem:[#allocation3 + $0x8] sm:$0xff] }
 0x1f9   : > { %v551_v3 = vpop.permute.xlu1 %550 }
 0x1fa   : > { %v580_v4 = vsub.f32 %v1377_v13, %v551_v3 }
 0x1fb   : > { %v541_v5 = vpop.permute.xlu0 %540 }
 0x1fc   : > { %v590_v6 = vmul.f32 1.442695, %v580_v4  ;;  %v578_v7 = vsub.f32 %v1381_v15, %v541_v5  ;;  %v524_v5 = vmul.f32 1.442695, %v515_v47 }
 0x1fd   : > { %v556_v8 = vpop.permute.xlu1 %555 }
 0x1fe   : > { %1234 = vpow2.f32 %v590_v6  ;;  %v586_v9 = vmul.f32 1.442695, %v578_v7  ;;  %v581_v10 = vsub.f32 %v1385_v17, %v556_v8  ;;  %v522_v8 = vmul.f32 1.442695, %v514_v41 }
 0x200   : > { %1236 = vpow2.f32 %v586_v9  ;;  %v592_v11 = vmul.f32 1.442695, %v581_v10  ;;  %v526_v9 = vmul.f32 1.442695, %v516_v37 }
 0x201   : > { %v546_v12 = vpop.permute.xlu1 %545 }
 0x202   : > { %1238 = vpow2.f32 %v592_v11  ;;  %v579_v14 = vsub.f32 %v1389_v19, %v546_v12 }
 0x204   : > { %v588_v16 = vmul.f32 1.442695, %v579_v14 }
 0x206   : > { %1240 = vpow2.f32 %v588_v16 }
 0x207   : > { %v571_v18 = vpop.permute.xlu1 %570 }
 0x208   : > { %v584_v13 = vsub.f32 %v1393_v21, %v571_v18 }
 0x20a   : > { %v598_v17 = vmul.f32 1.442695, %v584_v13 }
 0x20b   : > { %v1235_v20 = vpop.eup %1234  ;;  %v561_v23 = vpop.permute.xlu1 %560 }
 0x20c   : > { %v582_v15 = vsub.f32 %v1395_v22, %v561_v23  ;;  %v624_v25 = vsel %vm311_vm0, %v1235_v20, 0.0 }
 0x20d   : > { %v1237_v27 = vpop.eup %1236  ;;  %625 = vadd.xlane.f32.xlu0 %v624_v25 }
 0x20e   : > { %v594_v28 = vmul.f32 1.442695, %v582_v15  ;;  %v618_v29 = vsel %vm311_vm0, %v1237_v27, 0.0 }
 0x20f   : > { %v1239_v30 = vpop.eup %1238  ;;  %619 = vadd.xlane.f32.xlu1 %v618_v29  ;;  %v566_v19 = vpop.permute.xlu1 %565 }
 0x210   : > { %1242 = vpow2.f32 %v594_v28  ;;  %v583_v32 = vsub.f32 %v1401_v26, %v566_v19  ;;  %v627_v35 = vsel %vm311_vm0, %v1239_v30, 0.0  ;;  %v716_v54 = vpack.c.bf16 %v1239_v30, %v1235_v20  ;;  %v606_v20 = vld [vmem:[#allocation3 + $0x20] sm:$0xff] }
 0x211   : > { %1244 = vpow2.f32 %v598_v17  ;;  %v607_v17 = vld [vmem:[#allocation3 + $0x28] sm:$0xff] }
 0x212   : > { %v596_v21 = vmul.f32 1.442695, %v583_v32 }
 0x213   : > { %v1241_v39 = vpop.eup %1240  ;;  %628 = vadd.xlane.f32.xlu1 %v627_v35  ;;  %v576_v22 = vpop.permute.xlu1 %575  ;;  %v609_v35 = vld [vmem:[#allocation3 + $0x38] sm:$0xff] }
 0x214   : > { %1246 = vpow2.f32 %v596_v21  ;;  %v585_v43 = vsub.f32 %v1399_v24, %v576_v22  ;;  %v621_v48 = vsel %vm311_vm0, %v1241_v39, 0.0  ;;  %v715_v52 = vpack.c.bf16 %v1241_v39, %v1237_v27  ;;  %v608_v27 = vld [vmem:[#allocation3 + $0x30] sm:$0xff] }
 0x215   : > { %622 = vadd.xlane.f32.xlu0 %v621_v48 }
 0x216   : > { %v600_v55 = vmul.f32 1.442695, %v585_v43  ;;  %1181 = vmatprep.mubr.msk.bf16.mxu1 %vm311_vm0, %v715_v52 }
 0x217   : > { %1182 = vmatmul.mubr.msk.bf16.vlgmr.msra.gmra.mxu1 %vm311_vm0, %v716_v54 }
 0x218   : > { %1248 = vpow2.f32 %v600_v55 }
 0x219   : > { %1250 = vpow2.f32 %v524_v5 }
 0x21a   : > { %1252 = vpow2.f32 %v522_v8 }
 0x21b   : > { %1254 = vpow2.f32 %v526_v9  ;;  %v661_v9 = vld [vmem:[#allocation4 + $0x10] sm:$0xff] }
 0x21c   : > { %1256 = vpow2.f32 %v528_v40 }
 0x21d   : > { %v1243_v26 = vpop.eup %1242  ;;  %1258 = vpow2.f32 %v530_v45  ;;  %v659_v45 = vld [vmem:[#allocation4] sm:$0xff] }
 0x21e   : > { %v630_v58 = vsel %vm311_vm0, %v1243_v26, 0.0  ;;  %v1245_v62 = vpop.eup %1244  ;;  %1260 = vpow2.f32 %v532_v33 }
 0x21f   : > { %631 = vadd.xlane.f32.xlu0 %v630_v58  ;;  %v636_v2 = vsel %vm311_vm0, %v1245_v62, 0.0  ;;  %1262 = vpow2.f32 %v534_v31  ;;  %v662_v31 = vld [vmem:[#allocation4 + $0x18] sm:$0xff] }
 0x220   : > { %1264 = vpow2.f32 %v536_v34 }
 0x221   : > { %v1247_v0 = vpop.eup %1246 }
 0x222   : > { %v633_v24 = vsel %vm311_vm0, %v1247_v0, 0.0  ;;  %v717_v3 = vpack.c.bf16 %v1247_v0, %v1243_v26 }
 0x223   : > { %637 = vadd.xlane.f32.xlu0 %v636_v2  ;;  %634 = vadd.xlane.f32.xlu1 %v633_v24 }
 0x224   : > { %1185 = vmatprep.mubr.msk.bf16.mxu1 %vm311_vm0, %v717_v3 }
 0x225   : > { %v1249_v4 = vpop.eup %1248 }
 0x226   : > { %v639_v6 = vsel %vm311_vm0, %v1249_v4, 0.0  ;;  %v718_v7 = vpack.c.bf16 %v1249_v4, %v1245_v62  ;;  %v1251_v36 = vpop.eup %1250 }
 0x227   : > { %640 = vadd.xlane.f32.xlu1 %v639_v6  ;;  %v1253_v37 = vpop.eup %1252  ;;  %v611_v12 = vmul.f32 %v1251_v36, %v603_v63 }
 0x228   : > { %1186 = vmatmul.mubr.msk.bf16.gmra.mxu1 %vm311_vm0, %v718_v7  ;;  %v1255_v38 = vpop.eup %1254  ;;  %v610_v57 = vmul.f32 %v1253_v37, %v602_v50 }
 0x229   : > { %v1257_v41 = vpop.eup %1256  ;;  %v612_v51 = vmul.f32 %v1255_v38, %v604_v49 }
 0x22a   : > { %v1259_v42 = vpop.eup %1258  ;;  %v613_v1 = vmul.f32 %v1257_v41, %v605_v60 }
 0x22b   : > { %v1261_v44 = vpop.eup %1260  ;;  %v614_v15 = vmul.f32 %v1259_v42, %v606_v20 }
 0x22c   : > { %v1263_v46 = vpop.eup %1262  ;;  %v615_v19 = vmul.f32 %v1261_v44, %v607_v17 }
 0x22d   : > { %v1265_v47 = vpop.eup %1264  ;;  %v616_v30 = vmul.f32 %v1263_v46, %v608_v27 }
 0x22e   : > { %v617_v48 = vmul.f32 %v1265_v47, %v609_v35 }
 0x238   : > { %674 = vperm.xlu1 %1221, %v1251_v36  }
 0x239   : > { %669 = vperm.xlu0 %1220, %v1253_v37  }
 0x23c   : > { %679 = vperm.xlu1 %1221, %v1255_v38  }
 0x23d   : > { %684 = vperm.xlu0 %1220, %v1257_v41   ;;  %v660_v41 = vld [vmem:[#allocation4 + $0x8] sm:$0xff] }
 0x240   : > { %689 = vperm.xlu1 %1221, %v1259_v42  }
 0x241   : > { %694 = vperm.xlu0 %1220, %v1261_v44  }
 0x244   : > { %699 = vperm.xlu1 %1221, %v1263_v46  }
 0x245   : > { %704 = vperm.xlu0 %1220, %v1265_v47  }
 0x296   : > { %v626_v53 = vpop.xlane.xlu0 %625 }
 0x297   : > { %v644_v56 = vadd.f32 %v626_v53, %v612_v51 }
 0x298   : > { %v620_v59 = vpop.xlane.xlu1 %619 }
 0x299   : > { %653 = vst.msk [vmem:[#allocation3 + $0x10] sm:$0xff] %vm294_vm1, %v644_v56  ;;  %v642_v61 = vadd.f32 %v620_v59, %v610_v57  ;;  %v665_v59 = vld [vmem:[#allocation4 + $0x30] sm:$0xff] }
 0x29b   : > { %651 = vst.msk [vmem:[#allocation3] sm:$0xff] %vm294_vm1, %v642_v61  ;;  %v663_v61 = vld [vmem:[#allocation4 + $0x20] sm:$0xff] }
 0x29c   : > { %v629_v10 = vpop.xlane.xlu1 %628 }
 0x29d   : > { %v645_v11 = vadd.f32 %v629_v10, %v613_v1  ;;  %v666_v1 = vld [vmem:[#allocation4 + $0x38] sm:$0xff] }
 0x29e   : > { %v623_v14 = vpop.xlane.xlu0 %622 }
 0x29f   : > { %654 = vst.msk [vmem:[#allocation3 + $0x18] sm:$0xff] %vm294_vm1, %v645_v11  ;;  %v643_v16 = vadd.f32 %v623_v14, %v611_v12 }
 0x2a0   : > { %v857_v18 = vld [vmem:[#allocation3 + $0x10] sm:$0xff] }
 0x2a1   : > { %652 = vst.msk [vmem:[#allocation3 + $0x8] sm:$0xff] %vm294_vm1, %v643_v16  ;;  %1266 = vrcp.f32 %v857_v18  ;;  %v664_v16 = vld [vmem:[#allocation4 + $0x28] sm:$0xff] }
 0x2a2   : > { %v855_v13 = vld [vmem:[#allocation3] sm:$0xff] }
 0x2a3   : > { %1268 = vrcp.f32 %v855_v13 }
 0x2a6   : > { %v858_v23 = vld [vmem:[#allocation3 + $0x18] sm:$0xff] }
 0x2a7   : > { %1270 = vrcp.f32 %v858_v23 }
 0x2a8   : > { %v632_v25 = vpop.xlane.xlu0 %631  ;;  %v856_v28 = vld [vmem:[#allocation3 + $0x8] sm:$0xff] }
 0x2a9   : > { %v646_v29 = vadd.f32 %v632_v25, %v614_v15  ;;  %1272 = vrcp.f32 %v856_v28 }
 0x2ab   : > { %655 = vst.msk [vmem:[#allocation3 + $0x20] sm:$0xff] %vm294_vm1, %v646_v29 }
 0x2ac   : > { %v638_v32 = vpop.xlane.xlu0 %637  ;;  %v635_v21 = vpop.xlane.xlu1 %634 }
 0x2ad   : > { %v648_v39 = vadd.f32 %v638_v32, %v616_v30  ;;  %v647_v22 = vadd.f32 %v635_v21, %v615_v19 }
 0x2ae   : > { %v1267_v43 = vpop.eup %1266 }
 0x2af   : > { %657 = vst.msk [vmem:[#allocation3 + $0x30] sm:$0xff] %vm294_vm1, %v648_v39  ;;  %656 = vst.msk [vmem:[#allocation3 + $0x28] sm:$0xff] %vm294_vm1, %v647_v22  ;;  %883 = vperm.xlu1 %1221, %v1267_v43  }
 0x2b0   : > { %v641_v52 = vpop.xlane.xlu1 %640  ;;  %v1269_v55 = vpop.eup %1268 }
 0x2b1   : > { %v649_v54 = vadd.f32 %v641_v52, %v617_v48 }
 0x2b2   : > { %v859_v26 = vld [vmem:[#allocation3 + $0x20] sm:$0xff] }
 0x2b3   : > { %658 = vst.msk [vmem:[#allocation3 + $0x38] sm:$0xff] %vm294_vm1, %v649_v54  ;;  %873 = vperm.xlu1 %1221, %v1269_v55   ;;  %1274 = vrcp.f32 %v859_v26 }
 0x2b4   : > { %v1271_v58 = vpop.eup %1270  ;;  %v675_v7 = vpop.permute.xlu1 %674 }
 0x2b5   : > { %888 = vperm.xlu0 %1220, %v1271_v58   ;;  %v670_v8 = vpop.permute.xlu0 %669  ;;  %v708_v49 = vmul.f32 %v675_v7, %v660_v41 }
 0x2b6   : > { %v861_v62 = vld [vmem:[#allocation3 + $0x30] sm:$0xff]  ;;  %v860_v0 = vld [vmem:[#allocation3 + $0x28] sm:$0xff]  ;;  %v1273_v2 = vpop.eup %1272  ;;  %v707_v37 = vmul.f32 %v670_v8, %v659_v45 }
 0x2b7   : > { %1276 = vrcp.f32 %v861_v62 }
 0x2b8   : > { %1278 = vrcp.f32 %v860_v0  ;;  %v680_v40 = vpop.permute.xlu1 %679 }
 0x2b9   : > { %878 = vperm.xlu0 %1220, %v1273_v2   ;;  %v709_v33 = vmul.f32 %v680_v40, %v661_v9  ;;  %v685_v34 = vpop.permute.xlu0 %684 }
 0x2ba   : > { %v862_v24 = vld [vmem:[#allocation3 + $0x38] sm:$0xff]  ;;  %v710_v44 = vmul.f32 %v685_v34, %v662_v31 }
 0x2bb   : > { %1280 = vrcp.f32 %v862_v24 }
 0x2bc   : > { %v690_v53 = vpop.permute.xlu1 %689 }
 0x2bd   : > { %v695_v57 = vpop.permute.xlu0 %694  ;;  %v711_v12 = vmul.f32 %v690_v53, %v663_v61 }
 0x2be   : > { %v712_v15 = vmul.f32 %v695_v57, %v664_v16 }
 0x2c0   : > { %v1275_v3 = vpop.eup %1274  ;;  %v700_v60 = vpop.permute.xlu1 %699 }
 0x2c1   : > { %893 = vperm.xlu1 %1221, %v1275_v3   ;;  %v713_v63 = vmul.f32 %v700_v60, %v665_v59  ;;  %v705_v10 = vpop.permute.xlu0 %704 }
 0x2c2   : > { %v714_v13 = vmul.f32 %v705_v10, %v666_v1 }
 0x2c4   : > { %v1277_v4 = vpop.eup %1276 }
 0x2c5   : > { %v1279_v5 = vpop.eup %1278  ;;  %903 = vperm.xlu1 %1221, %v1277_v4  }
 0x2c6   : > { %898 = vperm.xlu0 %1220, %v1279_v5  }
 0x2c8   : > { %v1281_v6 = vpop.eup %1280 }
 0x2ca   : > { %908 = vperm.xlu0 %1220, %v1281_v6  }
 0x2d7   : > { %v1183_v36 = vpop.f32.mrf.mxu1 }
 0x2d8   : > { %v822_v38 = vadd.f32 %v1183_v36, %v709_v33 }
 0x2d9   : > { %v789_v42 = vpop.f32.mrf.mxu1 }
 0x2da   : > { %830 = vst.msk [vmem:[#allocation4 + $0x10] sm:$0xff] %vm311_vm0, %v822_v38  ;;  %v820_v46 = vadd.f32 %v789_v42, %v707_v37 }
 0x2db   : > { %v1184_v47 = vpop.f32.mrf.mxu1 }
 0x2dc   : > { %828 = vst.msk [vmem:[#allocation4] sm:$0xff] %vm311_vm0, %v820_v46  ;;  %v823_v50 = vadd.f32 %v1184_v47, %v710_v44 }
 0x2dd   : > { %v792_v51 = vpop.f32.mrf.mxu1 }
 0x2de   : > { %831 = vst.msk [vmem:[#allocation4 + $0x18] sm:$0xff] %vm311_vm0, %v823_v50  ;;  %v821_v56 = vadd.f32 %v792_v51, %v708_v49 }
 0x2e0   : > { %829 = vst.msk [vmem:[#allocation4 + $0x8] sm:$0xff] %vm311_vm0, %v821_v56 }
 0x2e1   : > { %v849_v28 = vld [vmem:[#allocation4 + $0x10] sm:$0xff] }
 0x2e3   : > { %v847_v32 = vld [vmem:[#allocation4] sm:$0xff] }
 0x2e5   : > { %v850_v39 = vld [vmem:[#allocation4 + $0x18] sm:$0xff] }
 0x2e7   : > { %v848_v55 = vld [vmem:[#allocation4 + $0x8] sm:$0xff] }
 0x2e8   : > { %v1187_v11 = vpop.f32.mrf.mxu1 }
 0x2e9   : > { %v826_v14 = vadd.f32 %v1187_v11, %v713_v63 }
 0x2ea   : > { %v805_v18 = vpop.f32.mrf.mxu1 }
 0x2eb   : > { %834 = vst.msk [vmem:[#allocation4 + $0x30] sm:$0xff] %vm311_vm0, %v826_v14  ;;  %v824_v20 = vadd.f32 %v805_v18, %v711_v12 }
 0x2ec   : > { %v1188_v23 = vpop.f32.mrf.mxu1 }
 0x2ed   : > { %832 = vst.msk [vmem:[#allocation4 + $0x20] sm:$0xff] %vm311_vm0, %v824_v20  ;;  %v827_v25 = vadd.f32 %v1188_v23, %v714_v13 }
 0x2ee   : > { %v808_v27 = vpop.f32.mrf.mxu1 }
 0x2ef   : > { %835 = vst.msk [vmem:[#allocation4 + $0x38] sm:$0xff] %vm311_vm0, %v827_v25  ;;  %v825_v17 = vadd.f32 %v808_v27, %v712_v15 }
 0x2f1   : > { %833 = vst.msk [vmem:[#allocation4 + $0x28] sm:$0xff] %vm311_vm0, %v825_v17 }
 0x2f2   : > { %v853_v3 = vld [vmem:[#allocation4 + $0x30] sm:$0xff] }
 0x2f4   : > { %v851_v62 = vld [vmem:[#allocation4 + $0x20] sm:$0xff] }
 0x2f6   : > { %v854_v45 = vld [vmem:[#allocation4 + $0x38] sm:$0xff] }
 0x2f8   : > { %v852_v5 = vld [vmem:[#allocation4 + $0x28] sm:$0xff] }
 0x32a   : > { %v884_v29 = vpop.permute.xlu1 %883 }
 0x32b   : > { %v913_v30 = vmul.f32 %v884_v29, %v849_v28 }
 0x32d   : > { %v1135_v19 = vpack.c.bf16 %v913_v30, %v913_v30 }
 0x32e   : > { %v874_v21 = vpop.permute.xlu1 %873 }
 0x32f   : > { %954 = vst.msk [vmem:[%s1573_s28 + $0x8] sm:$0xf] %vm951_vm2, %v1135_v19  ;;  %v911_v35 = vmul.f32 %v874_v21, %v847_v32 }
 0x330   : > { %v889_v22 = vpop.permute.xlu0 %888 }
 0x331   : > { %v1133_v43 = vpack.c.bf16 %v911_v35, %v911_v35  ;;  %v914_v48 = vmul.f32 %v889_v22, %v850_v39 }
 0x333   : > { %952 = vst.msk [vmem:[%s1573_s28] sm:$0xf] %vm951_vm2, %v1133_v43  ;;  %v1136_v52 = vpack.c.bf16 %v914_v48, %v914_v48 }
 0x334   : > { %v879_v54 = vpop.permute.xlu0 %878 }
 0x335   : > { %955 = vst.msk [vmem:[%s1573_s28 + $0xc] sm:$0xf] %vm951_vm2, %v1136_v52  ;;  %v912_v26 = vmul.f32 %v879_v54, %v848_v55 }
 0x337   : > { %v1134_v58 = vpack.c.bf16 %v912_v26, %v912_v26 }
 0x339   : > { %953 = vst.msk [vmem:[%s1573_s28 + $0x4] sm:$0xf] %vm951_vm2, %v1134_v58 }
 0x33c   : > { %v894_v0 = vpop.permute.xlu1 %893 }
 0x33d   : > { %v915_v2 = vmul.f32 %v894_v0, %v851_v62 }
 0x33f   : > { %v1137_v24 = vpack.c.bf16 %v915_v2, %v915_v2 }
 0x340   : > { %v904_v4 = vpop.permute.xlu1 %903 }
 0x341   : > { %956 = vst.msk [vmem:[%s1573_s28 + $0x10] sm:$0xf] %vm951_vm2, %v1137_v24  ;;  %v899_v6 = vpop.permute.xlu0 %898  ;;  %v917_v7 = vmul.f32 %v904_v4, %v853_v3 }
 0x342   : > { %v916_v8 = vmul.f32 %v899_v6, %v852_v5 }
 0x343   : > { %v1139_v9 = vpack.c.bf16 %v917_v7, %v917_v7 }
 0x344   : > { %v1138_v40 = vpack.c.bf16 %v916_v8, %v916_v8 }
 0x345   : > { %958 = vst.msk [vmem:[%s1573_s28 + $0x18] sm:$0xf] %vm951_vm2, %v1139_v9  ;;  %v909_v33 = vpop.permute.xlu0 %908 }
 0x346   : > { %957 = vst.msk [vmem:[%s1573_s28 + $0x14] sm:$0xf] %vm951_vm2, %v1138_v40  ;;  %v918_v31 = vmul.f32 %v909_v33, %v854_v45 }
 0x348   : > { %v1140_v34 = vpack.c.bf16 %v918_v31, %v918_v31 }
 0x34a   : > { %959 = vst.msk [vmem:[%s1573_s28 + $0x1c] sm:$0xf] %vm951_vm2, %v1140_v34 }
 0x34b PF: > { %s13_s14 = sadd.s32 1, %s1304_s14   ;;  %s1604_s12 = smov %s1300_s13 }
 0x34c   : > { %p10_p5 = scmp.ge.s32.totalorder %s13_s14, 4   ;;  %s1605_s13 = smov %s1607_s15 }
 0x34e   :  { %12 = sbr.rel (!%p10_p5) target bundleno = 2 (0x2), region = 76 }

</bundles_post_ra>
